<compile_context>
chip_gen: v6e
topology: v6e:2x2x1
jax: 0.10.0
libtpu: 0.0.40
codegen_flags: <defaults>
</compile_context>

<pallas_src>
import functools

import jax
import jax.numpy as jnp
from jax.experimental import pallas as pl
from jax.experimental.pallas import tpu as pltpu


def _round_up(x: int, m: int) -> int:
    return (x + m - 1) // m * m


def _unit_from_16bits(h):
    """16 random bits (in the low half of a uint32) -> float32 uniform in [0, 1).

    Mantissa bit-trick: place the 16 bits in the top of the 23-bit mantissa,
    OR in the exponent of 1.0, bitcast, subtract 1.0. Pure VPU bit ops.
    """
    m = jnp.left_shift(h, jnp.uint32(7))
    f = jax.lax.bitcast_convert_type(
        jnp.bitwise_or(m, jnp.uint32(0x3F800000)), jnp.float32)
    return f - 1.0


def _add_white_noise_kernel(x_ref, bits_ref, o_ref, *, noise_level):
    # bits_ref block has half as many rows as the audio block: each uint32
    # produces two Gaussian samples (one for the lower half of the rows, one
    # for the upper half).
    bits = bits_ref[...]                                   # uint32 (half, L)
    hi = jnp.right_shift(bits, jnp.uint32(16))
    lo = jnp.bitwise_and(bits, jnp.uint32(0xFFFF))

    u1 = 1.0 - _unit_from_16bits(hi)                       # (0, 1]  -> log finite
    u2 = _unit_from_16bits(lo)                             # [0, 1)

    r = jnp.sqrt(-2.0 * jnp.log(u1))
    theta = (2.0 * jnp.pi) * u2
    nl = jnp.float32(noise_level)
    z0 = (r * jnp.cos(theta)) * nl                         # scaled N(0, nl^2)
    z1 = (r * jnp.sin(theta)) * nl                         # independent of z0

    half = x_ref.shape[0] // 2
    x_lo = x_ref[:half, :].astype(jnp.float32)
    x_hi = x_ref[half:, :].astype(jnp.float32)
    o_ref[:half, :] = (x_lo + z0).astype(o_ref.dtype)
    o_ref[half:, :] = (x_hi + z1).astype(o_ref.dtype)


def add_white_noise(audio: jax.Array, key: jax.Array, noise_level: float = 0.01,
                    *, lanes: int = 1024, max_row_tile: int = 256) -> jax.Array:
    """Pallas equivalent of AddWhiteNoise.forward(audio). Elementwise, any shape."""
    orig_shape = audio.shape
    orig_dtype = audio.dtype
    total = audio.size

    # Flatten to a lane/sublane-dense 2D slab: (rows, lanes).
    rows = -(-total // lanes)                       # ceil
    tr = min(max_row_tile, _round_up(rows, 8))      # row tile, multiple of 8
    rows_p = _round_up(rows, tr)                    # padded rows (multiple of tr)
    padded = rows_p * lanes

    flat = audio.reshape(-1)
    if padded != total:
        flat = jnp.pad(flat, (0, padded - total))
    x2 = flat.reshape(rows_p, lanes)

    # One uint32 per TWO output elements (split into 2 x 16-bit uniforms).
    bits = jax.random.bits(key, (rows_p // 2, lanes), dtype=jnp.uint32)

    grid = (rows_p // tr,)
    kernel = functools.partial(_add_white_noise_kernel,
                               noise_level=float(noise_level))

    out2 = pl.pallas_call(
        kernel,
        out_shape=jax.ShapeDtypeStruct((rows_p, lanes), orig_dtype),
        grid=grid,
        in_specs=[
            pl.BlockSpec((tr, lanes), lambda i: (i, 0)),          # audio slab
            pl.BlockSpec((tr // 2, lanes), lambda i: (i, 0)),     # random bits
        ],
        out_specs=pl.BlockSpec((tr, lanes), lambda i: (i, 0)),
        compiler_params=pltpu.CompilerParams(
            dimension_semantics=("parallel",),   # tiles independent -> megacore OK
        ),
    )(x2, bits)

    return out2.reshape(-1)[:total].reshape(orig_shape)


if __name__ == "__main__":
    key = jax.random.PRNGKey(0)
    k_data, k_noise = jax.random.split(key)

    batch, samples = 2, 2048
    audio = jax.random.uniform(k_data, (batch, samples), dtype=jnp.float32,
                               minval=-1.0, maxval=1.0)

    noise_level = 0.01
    out = add_white_noise(audio, k_noise, noise_level=noise_level)
    out = jax.block_until_ready(out)

    # Sanity checks: shape/dtype preserved, finite, perturbation scale ~ noise_level.
    assert out.shape == audio.shape and out.dtype == audio.dtype
    diff = out - audio
    assert bool(jnp.all(jnp.isfinite(out)))
    emp_std = float(jnp.std(diff))
    assert 0.5 * noise_level < emp_std < 2.0 * noise_level, emp_std
    assert float(jnp.max(jnp.abs(diff))) < 10.0 * noise_level
    assert abs(float(jnp.mean(diff))) < 5.0 * noise_level

    print("KERNEL_OK")
</pallas_src>

<mosaic_0001>
module attributes {stable_mosaic.version = 11 : i64} {
  func.func @_add_white_noise_kernel(%arg0: i32, %arg1: memref<8x1024xf32, #tpu.memory_space<vmem>>, %arg2: memref<4x1024xi32, #tpu.memory_space<vmem>>, %arg3: memref<8x1024xf32, #tpu.memory_space<vmem>>) attributes {dimension_semantics = [#tpu.dimension_semantics<parallel>], iteration_bounds = array<i64: 1>, scalar_prefetch = 0 : i64, scratch_operands = 0 : i64, tpu.core_type = #tpu.core_type<tc>, window_params = [{transform_indices = @transform_0, window_bounds = array<i64: 8, 1024>}, {transform_indices = @transform_1, window_bounds = array<i64: 4, 1024>}, {transform_indices = @transform_2, window_bounds = array<i64: 8, 1024>}]} {
    %c0 = arith.constant 0 : index
    %c0_0 = arith.constant 0 : index
    %0 = vector.load %arg2[%c0, %c0_0] : memref<4x1024xi32, #tpu.memory_space<vmem>>, vector<4x1024xi32>
    %c16_i32 = arith.constant 16 : i32
    %1 = vector.broadcast %c16_i32 : i32 to vector<4x1024xi32>
    %2 = arith.shrui %0, %1 : vector<4x1024xi32>
    %c65535_i32 = arith.constant 65535 : i32
    %3 = vector.broadcast %c65535_i32 : i32 to vector<4x1024xi32>
    %4 = arith.andi %0, %3 : vector<4x1024xi32>
    %c7_i32 = arith.constant 7 : i32
    %5 = vector.broadcast %c7_i32 : i32 to vector<4x1024xi32>
    %6 = arith.shli %2, %5 : vector<4x1024xi32>
    %c1065353216_i32 = arith.constant 1065353216 : i32
    %7 = vector.broadcast %c1065353216_i32 : i32 to vector<4x1024xi32>
    %8 = arith.ori %6, %7 : vector<4x1024xi32>
    %9 = tpu.bitcast %8 : vector<4x1024xi32> -> vector<4x1024xf32>
    %cst = arith.constant 1.000000e+00 : f32
    %10 = vector.broadcast %cst : f32 to vector<4x1024xf32>
    %11 = arith.subf %9, %10 : vector<4x1024xf32>
    %cst_1 = arith.constant 1.000000e+00 : f32
    %12 = vector.broadcast %cst_1 : f32 to vector<4x1024xf32>
    %13 = arith.subf %12, %11 : vector<4x1024xf32>
    %c7_i32_2 = arith.constant 7 : i32
    %14 = vector.broadcast %c7_i32_2 : i32 to vector<4x1024xi32>
    %15 = arith.shli %4, %14 : vector<4x1024xi32>
    %c1065353216_i32_3 = arith.constant 1065353216 : i32
    %16 = vector.broadcast %c1065353216_i32_3 : i32 to vector<4x1024xi32>
    %17 = arith.ori %15, %16 : vector<4x1024xi32>
    %18 = tpu.bitcast %17 : vector<4x1024xi32> -> vector<4x1024xf32>
    %cst_4 = arith.constant 1.000000e+00 : f32
    %19 = vector.broadcast %cst_4 : f32 to vector<4x1024xf32>
    %20 = arith.subf %18, %19 : vector<4x1024xf32>
    %21 = math.log %13 : vector<4x1024xf32>
    %cst_5 = arith.constant -2.000000e+00 : f32
    %22 = vector.broadcast %cst_5 : f32 to vector<4x1024xf32>
    %23 = arith.mulf %22, %21 : vector<4x1024xf32>
    %24 = math.sqrt %23 : vector<4x1024xf32>
    %cst_6 = arith.constant 6.28318548 : f32
    %25 = vector.broadcast %cst_6 : f32 to vector<4x1024xf32>
    %26 = arith.mulf %25, %20 : vector<4x1024xf32>
    %27 = math.cos %26 : vector<4x1024xf32>
    %28 = arith.mulf %24, %27 : vector<4x1024xf32>
    %cst_7 = arith.constant 0.00999999977 : f32
    %29 = vector.broadcast %cst_7 : f32 to vector<4x1024xf32>
    %30 = arith.mulf %28, %29 : vector<4x1024xf32>
    %31 = math.sin %26 : vector<4x1024xf32>
    %32 = arith.mulf %24, %31 : vector<4x1024xf32>
    %cst_8 = arith.constant 0.00999999977 : f32
    %33 = vector.broadcast %cst_8 : f32 to vector<4x1024xf32>
    %34 = arith.mulf %32, %33 : vector<4x1024xf32>
    %c0_9 = arith.constant 0 : index
    %c0_10 = arith.constant 0 : index
    %35 = vector.load %arg1[%c0_9, %c0_10] : memref<8x1024xf32, #tpu.memory_space<vmem>>, vector<4x1024xf32>
    %c4 = arith.constant 4 : index
    %c0_11 = arith.constant 0 : index
    %36 = vector.load %arg1[%c4, %c0_11] : memref<8x1024xf32, #tpu.memory_space<vmem>>, vector<4x1024xf32>
    %37 = arith.addf %35, %30 : vector<4x1024xf32>
    %c0_12 = arith.constant 0 : index
    %c0_13 = arith.constant 0 : index
    %38 = vector.load %arg3[%c0_12, %c0_13] : memref<8x1024xf32, #tpu.memory_space<vmem>>, vector<4x1024xf32>
    tpu.vector_store %arg3[%c0_12, %c0_13], %37 {strides = array<i32>} : memref<8x1024xf32, #tpu.memory_space<vmem>>, vector<4x1024xf32>,
    %39 = arith.addf %36, %34 : vector<4x1024xf32>
    %c4_14 = arith.constant 4 : index
    %c0_15 = arith.constant 0 : index
    %40 = vector.load %arg3[%c4_14, %c0_15] : memref<8x1024xf32, #tpu.memory_space<vmem>>, vector<4x1024xf32>
    tpu.vector_store %arg3[%c4_14, %c0_15], %39 {strides = array<i32>} : memref<8x1024xf32, #tpu.memory_space<vmem>>, vector<4x1024xf32>,
    return
  }
  func.func @transform_0(%arg0: i32) -> (i32, i32) {
    %c0_i32 = arith.constant 0 : i32
    %c0_i32_0 = arith.constant 0 : i32
    return %arg0, %c0_i32 : i32, i32
  }
  func.func @transform_1(%arg0: i32) -> (i32, i32) {
    %c0_i32 = arith.constant 0 : i32
    %c0_i32_0 = arith.constant 0 : i32
    return %arg0, %c0_i32 : i32, i32
  }
  func.func @transform_2(%arg0: i32) -> (i32, i32) {
    %c0_i32 = arith.constant 0 : i32
    %c0_i32_0 = arith.constant 0 : i32
    return %arg0, %c0_i32 : i32, i32
  }
}

</mosaic_0001>

<bundles_post_ra>
// kernel: tpu_custom_call.1
= control target key start
LH: loop header
LB: loop body
LE: loop exit
PB: predicated region body
PF: predicated region fallthrough
CT: control target
= control target key end

     0   :  { %7 = vsyncpa [#allocation3], 0  ;;  %s3316_s0 = inlined_call_operand.hbm [shape: f32[8,1024], index: 0, kind: input, shape index: {}]   ;;  %s3317_s1 = inlined_call_operand.hbm [shape: u32[4,1024], index: 1, kind: input, shape index: {}]   ;;  %s3318_s2 = inlined_call_operand.hbm [shape: f32[8,1024], index: 2, kind: output, shape index: {}]  }
   0x1   :  { %8 = vsyncpa [#allocation6], 0 }
   0x2   :  { %9 = vsyncpa [#allocation4], 0  ;;  %s2227_s9 = smov [#allocation2]   ;;  %s2228_s11 = smov [#allocation5]  }
   0x3   :  { %s16_s10 = sshll.u32 %s2227_s9, 4  ;;  %s26_s12 = sshll.u32 %s2228_s11, 4  ;;  %s17_s10 = int_to_ptr.vmem [resolvable:$true] %s16_s10  ;;  %s27_s12 = int_to_ptr.vmem [resolvable:$true] %s26_s12 }
   0x4   :  { %s2169_s13 = scalar_lea.vmem %s17_s10, 1024  ;;  %p2174_p1 = scmp.lt.s32.totalorder %s17_s10, %s17_s10 }
   0x5   :  { %p2170_p0 = scmp.ne.s32.totalorder %s17_s10, %s2169_s13  ;;  %p2175_p2 = scmp.lt.s32.totalorder %s2169_s13, %s2169_s13 }
   0x7   :  { %p2176_p3 = por %p2175_p2, %p2174_p1 }
   0x9   :  { %p2177_p4 = pnand %p2176_p3, %p2170_p0 }
   0xb   :  { %2180 = shalt.err (!%p2177_p4)
}
   0xc   :  { %19 = dma.hbm_to_vmem [thread:$0]  %s3316_s0, 1024, %s17_s10, [#allocation3]  }
   0xd   :  { %s2189_s16 = scalar_lea.vmem %s27_s12, 512  ;;  %p2194_p6 = scmp.lt.s32.totalorder %s27_s12, %s27_s12 }
   0xe   :  { %p2190_p5 = scmp.ne.s32.totalorder %s27_s12, %s2189_s16  ;;  %p2195_p7 = scmp.lt.s32.totalorder %s2189_s16, %s2189_s16 }
  0x10   :  { %p2196_p8 = por %p2195_p7, %p2194_p6 }
  0x12   :  { %p2197_p9 = pnand %p2196_p8, %p2190_p5 }
  0x14   :  { %2200 = shalt.err (!%p2197_p9)
}
  0x15   :  { %29 = dma.hbm_to_vmem [thread:$0]  %s3317_s1, 512, %s27_s12, [#allocation6]  }
  0x16   :  { %2221 = dma.done.wait [#allocation3], 1024  }
  0x17   :  { %2222 = vsyncadd [#allocation3], 4294966272 }
  0x18   :  { %2223 = dma.done.wait [#allocation6], 512  }
  0x19   :  { %2224 = vsyncadd [#allocation6], 4294966784  ;;  %v36_v0 = vld [vmem:[#allocation5] sm:$0xff]  ;;  %v37_v7 = vld [vmem:[#allocation5 + $0x8] sm:$0xff]  ;;  %v2229_v43 = vmov 683565275  }
  0x1a   :  { %v40_v1 = vshrl.u32 %v36_v0, 16  ;;  %v44_v2 = vand.u32 65535, %v36_v0  ;;  %v45_v14 = vand.u32 65535, %v37_v7  ;;  %v41_v22 = vshrl.u32 %v37_v7, 16  ;;  %v2269_v35 = vld [vmem:[#allocation5 + $0x10] sm:$0xff]  ;;  %s2235_s0 = smov [#allocation7]  }
  0x1b   :  { %v42_v37 = vshrl.u32 %v2269_v35, 16  ;;  %v2230_v45 = vmov 2475754826   ;;  %v2231_v47 = vmov 2131351028   ;;  %s1966_s1 = sshll.u32 %s2235_s0, 4  ;;  %s1967_s1 = int_to_ptr.vmem [resolvable:$true] %s1966_s1 }
  0x1c   :  { %v48_v3 = vshll.u32 %v40_v1, 7  ;;  %v84_v4 = vshll.u32 %v44_v2, 7  ;;  %v85_v18 = vshll.u32 %v45_v14, 7  ;;  %v49_v30 = vshll.u32 %v41_v22, 7  ;;  %s2201_s19 = scalar_lea.vmem %s1967_s1, 1024  ;;  %p2206_p11 = scmp.lt.s32.totalorder %s1967_s1, %s1967_s1 }
  0x1d   :  { %v2232_v49 = vmov 2102212464   ;;  %v2233_v56 = vmov 920167782   ;;  %v3328_v60 = vmov 1326507024   ;;  %p2202_p10 = scmp.ne.s32.totalorder %s1967_s1, %s2201_s19  ;;  %p2207_p12 = scmp.lt.s32.totalorder %s2201_s19, %s2201_s19 }
  0x1e   :  { %v52_v5 = vor.u32 1065353216, %v48_v3  ;;  %v88_v6 = vor.u32 1065353216, %v84_v4  ;;  %v2264_v26 = vor.u32 1065353216, %v85_v18  ;;  %v2272_v40 = vor.u32 1065353216, %v49_v30 }
  0x1f   :  { %p2208_p13 = por %p2207_p12, %p2206_p11 }
  0x20   :  { %v1976_v8 = vadd.f32 -1.0, %v52_v5  ;;  %v1984_v9 = vadd.f32 -1.0, %v88_v6  ;;  %v92_v10 = vcombine.high %v88_v6, %v88_v6  ;;  %v56_v17 = vcombine.high %v52_v5, %v52_v5 }
  0x21   :  { %v1986_v31 = vadd.f32 -1.0, %v2264_v26  ;;  %p2209_p0 = pnand %p2208_p13, %p2202_p10 }
  0x22   :  { %v76_v11 = vsub.f32 1.0, %v1976_v8  ;;  %v2257_v12 = vmul.f32 6.2831855, %v1984_v9  ;;  %v1985_v13 = vadd.f32 -1.0, %v92_v10  ;;  %v1977_v25 = vadd.f32 -1.0, %v56_v17 }
  0x23   :  { %v2274_v41 = vmul.f32 6.2831855, %v1986_v31 }
  0x24   :  { %v203_v15 = vand.u32 2139095040, %v2257_v12  ;;  %v2260_v16 = vmul.f32 6.2831855, %v1985_v13  ;;  %2097 = vlog2.f32 %v76_v11  ;;  %v200_v21 = vand.u32 2147483647, %v2257_v12 }
  0x25   :  { %v77_v32 = vsub.f32 1.0, %v1977_v25  ;;  %v409_v4 = vand.u32 2139095040, %v2274_v41  ;;  %vm202_vm15 = vcmp.lt.s32.totalorder %v2257_v12, 0 }
  0x26   :  { %v204_v19 = vshrl.u32 %v203_v15, 23  ;;  %v306_v20 = vand.u32 2139095040, %v2260_v16  ;;  %v207_v29 = vand.u32 8388607, %v200_v21  ;;  %v303_v51 = vand.u32 2147483647, %v2260_v16 }
  0x27   :  { %2099 = vlog2.f32 %v77_v32  ;;  %v1978_v32 = vadd.f32 -1.0, %v2272_v40 }
  0x28   :  { %v1992_v23 = vadd.s32 4294967169, %v204_v19  ;;  %v307_v24 = vshrl.u32 %v306_v20, 23  ;;  %v208_v38 = vor.u32 8388608, %v207_v29  ;;  %v310_v15 = vand.u32 8388607, %v303_v51 }
  0x29   :  { %v410_v20 = vshrl.u32 %v409_v4, 23 }
  0x2a   :  { %v210_v27 = vadd.s32 1, %v1992_v23  ;;  %v1996_v28 = vadd.s32 4294967169, %v307_v24  ;;  %v248_v62 = vshll.u32 %v208_v38, 8  ;;  %v311_v31 = vor.u32 8388608, %v310_v15 }
  0x2c   :  { %vm211_vm0 = vcmp.gt.s32.totalorder %v210_v27, 0  ;;  %v313_v34 = vadd.s32 1, %v1996_v28 }
  0x2d   :  { %v212_v33 = vsel %vm211_vm0, %v210_v27, 0  ;;  %vm2408_vm0 = vcmp.le.f32.partialorder %v200_v21, 0.7853982 }
  0x2e   :  { %v214_v36 = vand.u32 31, %v212_v33  ;;  %v213_v39 = vshrl.u32 %v212_v33, 5  ;;  %vm314_vm1 = vcmp.gt.s32.totalorder %v313_v34, 0  ;;  %v93_v33 = vcombine.high %v2264_v26, %v2264_v26 }
  0x2f   :  { %v315_v3 = vsel %vm314_vm1, %v313_v34, 0  ;;  %v46_v34 = vand.u32 65535, %v2269_v35 }
  0x30   :  { %v215_v42 = vsub.s32 32, %v214_v36  ;;  %v217_v44 = vshll.u32 %v2229_v43, %v214_v36  ;;  %v220_v46 = vshll.u32 %v2230_v45, %v214_v36  ;;  %v223_v48 = vshll.u32 %v2231_v47, %v214_v36 }
  0x31   :  { %v226_v50 = vshll.u32 %v2232_v49, %v214_v36  ;;  %v2098_v52 = vpop.eup %2097  ;;  %v229_v57 = vshll.u32 %v2233_v56, %v214_v36  ;;  %vm232_vm2 = vcmp.lt.s32.totalorder %v213_v39, 1  ;;  %vm233_vm3 = vcmp.lt.s32.totalorder %v213_v39, 2 }
  0x32   :  { %v218_v53 = vshrl.u32 %v2230_v45, %v215_v42  ;;  %v221_v54 = vshrl.u32 %v2231_v47, %v215_v42  ;;  %v224_v55 = vshrl.u32 %v2232_v49, %v215_v42  ;;  %v216_v58 = vshrl.u32 %v2229_v43, %v215_v42 }
  0x33   :  { %v227_v59 = vshrl.u32 %v2233_v56, %v215_v42  ;;  %v230_v61 = vshrl.u32 %v3328_v60, %v215_v42  ;;  %v113_v2 = vmul.f32 0.6931472, %v2098_v52  ;;  %vm234_vm4 = vcmp.lt.s32.totalorder %v213_v39, 3 }
  0x34   :  { %v219_v63 = vor.u32 %v218_v53, %v217_v44  ;;  %v222_v0 = vor.u32 %v221_v54, %v220_v46  ;;  %v225_v1 = vor.u32 %v224_v55, %v223_v48  ;;  %vm235_vm5 = vcmp.lt.s32.totalorder %v213_v39, 4  ;;  %v2100_v42 = vpop.eup %2099 }
  0x35   :  { %v228_v5 = vor.u32 %v227_v59, %v226_v50  ;;  %v231_v6 = vor.u32 %v230_v61, %v229_v57  ;;  %v2292_v17 = vmul.f32 -2.0, %v113_v2  ;;  %v317_v25 = vand.u32 31, %v315_v3 }
  0x36   :  { %v236_v7 = vsel %vm232_vm2, %v216_v58, %v219_v63  ;;  %v237_v8 = vsel %vm235_vm5, %v225_v1, 2102212464  ;;  %v240_v9 = vsel %vm232_vm2, %v219_v63, %v222_v0  ;;  %v244_v10 = vsel %vm232_vm2, %v222_v0, %v225_v1 }
  0x37   :  { %v238_v11 = vsel %vm234_vm4, %v222_v0, %v237_v8  ;;  %v241_v13 = vsel %vm235_vm5, %v228_v5, 920167782  ;;  %v245_v14 = vsel %vm235_vm5, %v231_v6, 1326507024  ;;  %2101 = vrsqrt.f32 %v2292_v17 }
  0x38   :  { %v242_v18 = vsel %vm234_vm4, %v225_v1, %v241_v13  ;;  %v246_v19 = vsel %vm234_vm4, %v228_v5, %v245_v14  ;;  %v239_v22 = vsel %vm233_vm3, %v236_v7, %v238_v11  ;;  %v316_v36 = vshrl.u32 %v315_v3, 5 }
  0x39   :  { %v243_v23 = vsel %vm233_vm3, %v240_v9, %v242_v18  ;;  %v247_v24 = vsel %vm233_vm3, %v244_v10, %v246_v19  ;;  %v318_v38 = vsub.s32 32, %v317_v25  ;;  %v2000_v39 = vadd.s32 4294967169, %v410_v20 }
  0x3a   :  { %v2297_v27 = vmul.u32.u64.low %v248_v62, %v247_v24  ;;  %v2298_v28 = vmul.u32.u64.high %v248_v62, %v247_v24, %v2297_v27  ;;  %v2300_v29 = vmul.u32.u64.low %v248_v62, %v243_v23  ;;  %v2301_v30 = vmul.u32.u64.high %v248_v62, %v243_v23, %v2300_v29 }
  0x3b   :  { %v255_v44 = vmul.u32 %v248_v62, %v239_v22  ;;  %v320_v46 = vshll.u32 %v2229_v43, %v317_v25  ;;  %v323_v48 = vshll.u32 %v2230_v45, %v317_v25  ;;  %v326_v50 = vshll.u32 %v2231_v47, %v317_v25 }
  0x3c   :  { %vm257_vm6 = vc.u32 %v2298_v28, %v2300_v29  ;;  %v258_v26 = vadd.s32 1, %v2301_v30  ;;  %v329_v52 = vshll.u32 %v2232_v49, %v317_v25  ;;  %v332_v53 = vshll.u32 %v2233_v56, %v317_v25 }
  0x3d   :  { %v321_v54 = vshrl.u32 %v2230_v45, %v318_v38  ;;  %v324_v55 = vshrl.u32 %v2231_v47, %v318_v38  ;;  %v327_v57 = vshrl.u32 %v2232_v49, %v318_v38  ;;  %v330_v58 = vshrl.u32 %v2233_v56, %v318_v38 }
  0x3e   :  { %v259_v59 = vsel %vm257_vm6, %v258_v26, %v2301_v30  ;;  %v333_v61 = vshrl.u32 %v3328_v60, %v318_v38  ;;  %vm335_vm7 = vcmp.lt.s32.totalorder %v316_v36, 1  ;;  %vm338_vm8 = vcmp.lt.s32.totalorder %v316_v36, 4 }
  0x3f   :  { %v260_v62 = vadd.s32 %v259_v59, %v255_v44  ;;  %v322_v63 = vor.u32 %v321_v54, %v320_v46  ;;  %v325_v0 = vor.u32 %v324_v55, %v323_v48  ;;  %v328_v1 = vor.u32 %v327_v57, %v326_v50 }
  0x40   :  { %v319_v2 = vshrl.u32 %v2229_v43, %v318_v38  ;;  %v331_v3 = vor.u32 %v330_v58, %v329_v52  ;;  %v334_v4 = vor.u32 %v333_v61, %v332_v53  ;;  %vm337_vm9 = vcmp.lt.s32.totalorder %v316_v36, 3 }
  0x41   :  { %v261_v5 = vadd.s32 536870912, %v260_v62  ;;  %vm336_vm10 = vcmp.lt.s32.totalorder %v316_v36, 2  ;;  %v340_v6 = vsel %vm338_vm8, %v328_v1, 2102212464  ;;  %v343_v7 = vsel %vm335_vm7, %v322_v63, %v325_v0 }
  0x42   :  { %v344_v8 = vsel %vm338_vm8, %v331_v3, 920167782  ;;  %v351_v9 = vshll.u32 %v311_v31, 8  ;;  %v78_v10 = vsub.f32 1.0, %v1978_v32  ;;  %v406_v11 = vand.u32 2147483647, %v2274_v41 }
  0x43   :  { %v2328_v13 = vshrl.u32 %v261_v5, 30  ;;  %v345_v14 = vsel %vm337_vm9, %v328_v1, %v344_v8  ;;  %v347_v15 = vsel %vm335_vm7, %v325_v0, %v328_v1  ;;  %v416_v18 = vadd.s32 1, %v2000_v39 }
  0x44   :  { %v339_v19 = vsel %vm335_vm7, %v319_v2, %v322_v63  ;;  %v341_v20 = vsel %vm337_vm9, %v325_v0, %v340_v6  ;;  %v346_v22 = vsel %vm336_vm10, %v343_v7, %v345_v14  ;;  %v348_v23 = vsel %vm338_vm8, %v334_v4, 1326507024  ;;  %v2102_v39 = vpop.eup %2101 }
  0x45   :  { %v263_v24 = vshll.u32 %v2328_v13, 30  ;;  %v349_v25 = vsel %vm337_vm9, %v331_v3, %v348_v23  ;;  %v57_v27 = vcombine.high %v2272_v40, %v2272_v40  ;;  %v1987_v30 = vadd.f32 -1.0, %v93_v33 }
  0x46   :  { %v350_v31 = vsel %vm336_vm10, %v347_v15, %v349_v25  ;;  %v2341_v32 = vmul.u32.u64.low %v351_v9, %v346_v22  ;;  %v2342_v38 = vmul.u32.u64.high %v351_v9, %v346_v22, %v2341_v32  ;;  %2103 = vlog2.f32 %v78_v10 }
  0x47   :  { %v2345_v44 = vsub.s32 %v260_v62, %v263_v24  ;;  %v342_v46 = vsel %vm336_vm10, %v339_v19, %v341_v20  ;;  %v413_v48 = vand.u32 8388607, %v406_v11  ;;  %vm417_vm11 = vcmp.gt.s32.totalorder %v416_v18, 0 }
  0x48   :  { %v115_v50 = vmul.f32 0.6931472, %v2100_v42  ;;  %v2350_v26 = vmul.u32.u64.low %v351_v9, %v350_v31  ;;  %v2351_v40 = vmul.u32.u64.high %v351_v9, %v350_v31, %v2350_v26  ;;  %v50_v52 = vshll.u32 %v42_v37, 7 }
  0x49   :  { %v266_v33 = vsub.s32 0, %v2345_v44  ;;  %v86_v53 = vshll.u32 %v46_v34, 7  ;;  %v358_v54 = vmul.u32 %v351_v9, %v342_v46  ;;  %v361_v36 = vadd.s32 1, %v2342_v38 }
  0x4a   :  { %v2359_v55 = vadd.f32 -1.0, %v57_v27  ;;  %v418_v57 = vsel %vm417_vm11, %v416_v18, 0  ;;  %v414_v42 = vor.u32 8388608, %v413_v48  ;;  %v2362_v59 = vmul.f32 6.2831855, %v1987_v30 }
  0x4b   :  { %v1993_v58 = vmin.u32 %v266_v33, %v2345_v44  ;;  %v2364_v61 = vmul.f32 -2.0, %v115_v50  ;;  %vm360_vm12 = vc.u32 %v2351_v40, %v2341_v32  ;;  %v420_v37 = vand.u32 31, %v418_v57 }
  0x4c   :  { %v362_v35 = vsel %vm360_vm12, %v361_v36, %v2342_v38  ;;  %v2369_v34 = vor.u32 1065353216, %v50_v52  ;;  %v2371_v63 = vor.u32 1065353216, %v86_v53  ;;  %v79_v1 = vsub.f32 1.0, %v2359_v55 }
  0x4d   :  { %v268_v62 = vclz %v1993_v58  ;;  %v363_v0 = vadd.s32 %v362_v35, %v358_v54  ;;  %v421_v2 = vsub.s32 32, %v420_v37  ;;  %v509_v3 = vand.u32 2147483647, %v2362_v59 }
  0x4e   :  { %v141_v4 = vand.u32 2147483648, %v2292_v17  ;;  %v2376_v6 = vshll.u32 %v414_v42, 8  ;;  %v512_v7 = vand.u32 2139095040, %v2362_v59  ;;  %v2380_v8 = vmul.f32 %v2102_v39, %v2292_v17 }
  0x4f   :  { %v1994_v5 = vadd.s32 4294967294, %v268_v62  ;;  %v256_v9 = vadd.s32 %v2300_v29, %v2298_v28  ;;  %2105 = vrsqrt.f32 %v2364_v61  ;;  %v364_v10 = vadd.s32 536870912, %v363_v0 }
  0x50   :  { %v423_v14 = vshll.u32 %v2229_v43, %v420_v37  ;;  %v426_v15 = vshll.u32 %v2230_v45, %v420_v37  ;;  %v432_v18 = vshll.u32 %v2232_v49, %v420_v37  ;;  %v424_v22 = vshrl.u32 %v2230_v45, %v421_v2 }
  0x51   :  { %vm1995_vm13 = vcmp.lt.s32.totalorder %v1994_v5, 0  ;;  %v2388_v20 = vshrl.u32 %v364_v10, 30  ;;  %v427_v23 = vshrl.u32 %v2231_v47, %v421_v2  ;;  %v433_v27 = vshrl.u32 %v2233_v56, %v421_v2 }
  0x52   :  { %v271_v19 = vsel %vm1995_vm13, 0, %v1994_v5  ;;  %vm138_vm14 = vcmp.eq.f32.partialorder %v2292_v17, inf  ;;  %v419_v31 = vshrl.u32 %v418_v57, 5  ;;  %v429_v38 = vshll.u32 %v2231_v47, %v420_v37 }
  0x53   :  { %v2104_v24 = vpop.eup %2103  ;;  %v272_v25 = vsub.s32 32, %v271_v19  ;;  %v273_v28 = vshll.u32 %v2345_v44, %v271_v19  ;;  %v276_v29 = vsub.s32 4294967266, %v271_v19  ;;  %v366_v30 = vshll.u32 %v2388_v20, 30 }
  0x54   :  { %v430_v39 = vshrl.u32 %v2232_v49, %v421_v2  ;;  %v435_v50 = vshll.u32 %v2233_v56, %v420_v37  ;;  %v436_v26 = vshrl.u32 %v3328_v60, %v421_v2  ;;  %v2403_v33 = vmul.f32 0.6931472, %v2104_v24 }
  0x55   :  { %v274_v46 = vshrl.u32 %v256_v9, %v272_v25  ;;  %v277_v48 = vadd.s32 127, %v276_v29  ;;  %v2401_v44 = vsub.s32 %v363_v0, %v366_v30  ;;  %v422_v52 = vshrl.u32 %v2229_v43, %v421_v2 }
  0x56   :  { %v425_v53 = vor.u32 %v424_v22, %v423_v14  ;;  %v428_v58 = vor.u32 %v427_v23, %v426_v15  ;;  %v434_v42 = vor.u32 %v433_v27, %v432_v18  ;;  %v431_v62 = vor.u32 %v430_v39, %v429_v38 }
  0x57   :  { %v275_v36 = vor.u32 %v274_v46, %v273_v28  ;;  %v278_v57 = vshll.u32 %v277_v48, 23  ;;  %v369_v37 = vsub.s32 0, %v2401_v44  ;;  %vm438_vm1 = vcmp.lt.s32.totalorder %v419_v31, 1 }
  0x58   :  { %vm441_vm2 = vcmp.lt.s32.totalorder %v419_v31, 4  ;;  %v437_v5 = vor.u32 %v436_v26, %v435_v50  ;;  %vm440_vm3 = vcmp.lt.s32.totalorder %v419_v31, 3  ;;  %v286_v2 = vsub.s32 4, %v2328_v13 }
  0x59   :  { %v279_v35 = vor.u32 4788187, %v278_v57  ;;  %v282_v0 = vcvt.s32.f32 %v275_v36  ;;  %v1997_v21 = vmin.u32 %v369_v37, %v2401_v44  ;;  %vm439_vm4 = vcmp.lt.s32.totalorder %v419_v31, 2 }
  0x5a   :  { %v443_v9 = vsel %vm441_vm2, %v431_v62, 2102212464  ;;  %v446_v14 = vsel %vm438_vm1, %v425_v53, %v428_v58  ;;  %v447_v15 = vsel %vm441_vm2, %v434_v42, 920167782  ;;  %v513_v18 = vshrl.u32 %v512_v7, 23 }
  0x5b   :  { %v280_v10 = vand.u32 2147483647, %v279_v35  ;;  %v371_v19 = vclz %v1997_v21  ;;  %v442_v22 = vsel %vm438_vm1, %v422_v52, %v425_v53  ;;  %v448_v23 = vsel %vm440_vm3, %v431_v62, %v447_v15 }
  0x5c   :  { %v450_v24 = vsel %vm438_vm1, %v428_v58, %v431_v62  ;;  %v2106_v25 = vpop.eup %2105  ;;  %vm140_vm5 = vcmp.eq.f32.partialorder %v2292_v17, 0.0  ;;  %v444_v29 = vsel %vm440_vm3, %v428_v58, %v443_v9  ;;  %v449_v27 = vsel %vm439_vm4, %v446_v14, %v448_v23 }
  0x5d   :  { %v283_v28 = vmul.f32 %v282_v0, %v280_v10  ;;  %v451_v30 = vsel %vm441_vm2, %v437_v5, 1326507024  ;;  %v1998_v38 = vadd.s32 4294967294, %v371_v19  ;;  %v139_v48 = vsel %vm138_vm14, %v2292_v17, %v2380_v8 }
  0x5e   :  { %v452_v7 = vsel %vm440_vm3, %v434_v42, %v451_v30  ;;  %v2427_v39 = vmul.u32.u64.low %v2376_v6, %v449_v27  ;;  %v2428_v46 = vmul.u32.u64.high %v2376_v6, %v449_v27, %v2427_v39  ;;  %v359_v26 = vadd.s32 %v2341_v32, %v2351_v40 }
  0x5f   :  { %v284_v50 = vxor.u32 2147483648, %v283_v28  ;;  %v453_v52 = vsel %vm439_vm4, %v450_v24, %v452_v7  ;;  %vm1999_vm6 = vcmp.lt.s32.totalorder %v1998_v38, 0  ;;  %v445_v53 = vsel %vm439_vm4, %v442_v22, %v444_v29 }
  0x60   :  { %v2440_v36 = vmul.u32.u64.low %v2376_v6, %v453_v52  ;;  %v2441_v57 = vmul.u32.u64.high %v2376_v6, %v453_v52, %v2440_v36  ;;  %v287_v8 = vsel %vm202_vm15, %v286_v2, %v2328_v13  ;;  %v374_v42 = vsel %vm1999_vm6, 0, %v1998_v38 }
  0x61   :  { %v285_v58 = vsel %vm202_vm15, %v284_v50, %v283_v28  ;;  %v2004_v37 = vadd.s32 4294967169, %v513_v18  ;;  %vm305_vm7 = vcmp.lt.s32.totalorder %v2260_v16, 0  ;;  %v375_v40 = vsub.s32 32, %v374_v42 }
  0x62   :  { %v288_v32 = vsel %vm2408_vm0, %v2257_v12, %v285_v58  ;;  %v376_v31 = vshll.u32 %v2401_v44, %v374_v42  ;;  %v379_v62 = vsub.s32 4294967266, %v374_v42  ;;  %v461_v35 = vmul.u32 %v2376_v6, %v445_v53 }
  0x63   :  { %2107 = vcosq.f32 %v288_v32  ;;  %v464_v0 = vadd.s32 1, %v2428_v46  ;;  %v519_v5 = vadd.s32 1, %v2004_v37  ;;  %v2457_v13 = vsel %vm2408_vm0, 0, %v287_v8 }
  0x64   :  { %2109 = vsinq.f32 %v288_v32  ;;  %v377_v2 = vshrl.u32 %v359_v26, %v375_v40  ;;  %v380_v21 = vadd.s32 127, %v379_v62  ;;  %v2460_v9 = vand.u32 3, %v2457_v13 }
  0x65   :  { %v2463_v10 = vmul.f32 -2.0, %v2403_v33  ;;  %vm463_vm8 = vc.u32 %v2441_v57, %v2427_v39  ;;  %vm520_vm9 = vcmp.gt.s32.totalorder %v519_v5, 0  ;;  %vm2469_vm10 = vcmp.le.f32.partialorder %v303_v51, 0.7853982 }
  0x66   :  { %v378_v44 = vor.u32 %v377_v2, %v376_v31  ;;  %v381_v54 = vshll.u32 %v380_v21, 23  ;;  %v465_v14 = vsel %vm463_vm8, %v464_v0, %v2428_v46  ;;  %v521_v15 = vsel %vm520_vm9, %v519_v5, 0 }
  0x67   :  { %v389_v18 = vsub.s32 4, %v2388_v20  ;;  %v466_v19 = vadd.s32 %v465_v14, %v461_v35  ;;  %v516_v33 = vand.u32 8388607, %v509_v3  ;;  %v523_v22 = vand.u32 31, %v521_v15 }
  0x68   :  { %v2481_v51 = vsel %vm140_vm5, %v141_v4, %v139_v48  ;;  %v382_v23 = vor.u32 4788187, %v381_v54  ;;  %v385_v24 = vcvt.s32.f32 %v378_v44  ;;  %2111 = vlog2.f32 %v79_v1 }
  0x69   :  { %v2486_v28 = vmul.f32 %v2106_v25, %v2364_v61  ;;  %2113 = vrsqrt.f32 %v2463_v10  ;;  %v467_v29 = vadd.s32 536870912, %v466_v19  ;;  %v524_v27 = vsub.s32 32, %v523_v22 }
  0x6a   :  { %vm294_vm11 = vcmp.lt.s32.totalorder %v2460_v9, 2  ;;  %vm295_vm12 = vcmp.eq.s32.totalorder %v2460_v9, 0  ;;  %vm298_vm13 = vcmp.eq.s32.totalorder %v2460_v9, 2  ;;  %v383_v17 = vand.u32 2147483647, %v382_v23 }
  0x6b   :  { %v390_v4 = vsel %vm305_vm7, %v389_v18, %v2388_v20  ;;  %v2495_v55 = vshrl.u32 %v467_v29, 30  ;;  %v517_v1 = vor.u32 8388608, %v516_v33  ;;  %v526_v25 = vshll.u32 %v2229_v43, %v523_v22 }
  0x6c   :  { %v386_v30 = vmul.f32 %v385_v24, %v383_v17  ;;  %v527_v38 = vshrl.u32 %v2230_v45, %v524_v27  ;;  %v529_v7 = vshll.u32 %v2230_v45, %v523_v22  ;;  %v530_v46 = vshrl.u32 %v2231_v47, %v524_v27 }
  0x6d   :  { %vm292_vm14 = vweird.f32 %v2257_v12  ;;  %v469_v48 = vshll.u32 %v2495_v55, 30  ;;  %v532_v50 = vshll.u32 %v2231_v47, %v523_v22  ;;  %v533_v20 = vshrl.u32 %v2232_v49, %v524_v27 }
  0x6e   :  { %v535_v26 = vshll.u32 %v2232_v49, %v523_v22  ;;  %v387_v52 = vxor.u32 2147483648, %v386_v30  ;;  %v536_v53 = vshrl.u32 %v2233_v56, %v524_v27  ;;  %v538_v36 = vshll.u32 %v2233_v56, %v523_v22 }
  0x6f   :  { %v539_v58 = vshrl.u32 %v3328_v60, %v524_v27  ;;  %v2511_v8 = vsel %vm2469_vm10, 0, %v390_v4  ;;  %v2513_v42 = vsub.s32 %v466_v19, %v469_v48  ;;  %v522_v37 = vshrl.u32 %v521_v15, 5  ;;  %v1888_v48 = vld [vmem:[#allocation2] sm:$0xf] }
  0x70   :  { %v2515_v32 = vshll.u32 %v517_v1, 8  ;;  %v2517_v40 = vpop.eup %2107  ;;  %v388_v31 = vsel %vm305_vm7, %v387_v52, %v386_v30  ;;  %v525_v62 = vshrl.u32 %v2229_v43, %v524_v27  ;;  %v528_v35 = vor.u32 %v527_v38, %v526_v25 }
  0x71   :  { %v531_v0 = vor.u32 %v530_v46, %v529_v7  ;;  %v2522_v5 = vpop.eup %2109  ;;  %v3326_v2 = vxor.u32 2147483648, %v2517_v40  ;;  %v391_v21 = vsel %vm2469_vm10, %v2260_v16, %v388_v31  ;;  %v472_v44 = vsub.s32 0, %v2513_v42 }
  0x72   :  { %v534_v54 = vor.u32 %v533_v20, %v532_v50  ;;  %v3327_v14 = vxor.u32 2147483648, %v2522_v5  ;;  %2115 = vcosq.f32 %v391_v21  ;;  %v537_v15 = vor.u32 %v536_v53, %v535_v26 }
  0x73   :  { %v540_v18 = vor.u32 %v539_v58, %v538_v36  ;;  %v300_v19 = vsel %vm298_vm13, %v3326_v2, %v2522_v5  ;;  %vm145_vm15 = vcmp.eq.f32.partialorder %v2364_v61, inf  ;;  %2117 = vsinq.f32 %v391_v21 }
  0x74   :  { %v2001_v6 = vmin.u32 %v472_v44, %v2513_v42  ;;  %vm541_vm0 = vcmp.lt.s32.totalorder %v522_v37, 1  ;;  %v297_v33 = vsel %vm295_vm12, %v2517_v40, %v3327_v14  ;;  %vm542_vm1 = vcmp.lt.s32.totalorder %v522_v37, 2 }
  0x75   :  { %vm543_vm2 = vcmp.lt.s32.totalorder %v522_v37, 3  ;;  %vm544_vm3 = vcmp.lt.s32.totalorder %v522_v37, 4  ;;  %v2542_v22 = vpop.eup %2111  ;;  %v301_v23 = vsel %vm294_vm11, %v297_v33, %v300_v19  ;;  %v545_v29 = vsel %vm541_vm0, %v525_v62, %v528_v35 }
  0x76   :  { %v474_v24 = vclz %v2001_v6  ;;  %v546_v27 = vsel %vm544_vm3, %v534_v54, 2102212464  ;;  %v2548_v17 = vpop.eup %2113  ;;  %v302_v4 = vsel %vm292_vm14, nan, %v301_v23  ;;  %v549_v25 = vsel %vm541_vm0, %v528_v35, %v531_v0 }
  0x77   :  { %v547_v1 = vsel %vm543_vm2, %v531_v0, %v546_v27  ;;  %v550_v30 = vsel %vm544_vm3, %v537_v15, 920167782  ;;  %v1024_v38 = vmul.f32 %v302_v4, %v2481_v51  ;;  %v396_v9 = vand.u32 3, %v2511_v8 }
  0x78   :  { %v2002_v7 = vadd.s32 4294967294, %v474_v24  ;;  %v551_v46 = vsel %vm543_vm2, %v534_v54, %v550_v30  ;;  %v462_v50 = vadd.s32 %v2427_v39, %v2441_v57  ;;  %v553_v26 = vsel %vm541_vm0, %v531_v0, %v534_v54 }
  0x79   :  { %v552_v20 = vsel %vm542_vm1, %v549_v25, %v551_v46  ;;  %v554_v52 = vsel %vm544_vm3, %v540_v18, 1326507024  ;;  %v1032_v53 = vmul.f32 0.01, %v1024_v38  ;;  %v548_v36 = vsel %vm542_vm1, %v545_v29, %v547_v1 }
  0x7a   :  { %vm2003_vm4 = vcmp.lt.s32.totalorder %v2002_v7, 0  ;;  %v555_v58 = vsel %vm543_vm2, %v537_v15, %v554_v52  ;;  %v2567_v35 = vmul.u32.u64.low %v2515_v32, %v552_v20  ;;  %v2568_v21 = vmul.u32.u64.high %v2515_v32, %v552_v20, %v2567_v35 }
  0x7b   :  { %v477_v31 = vsel %vm2003_vm4, 0, %v2002_v7  ;;  %v556_v62 = vsel %vm542_vm1, %v553_v26, %v555_v58  ;;  %v1904_v39 = vadd.f32 %v1888_v48, %v1032_v53  ;;  %vm395_vm5 = vweird.f32 %v2260_v16  ;;  %v1897_v16 = vld [vmem:[#allocation2 + $0x8] sm:$0xf0] }
  0x7c   :  { %v478_v57 = vsub.s32 32, %v477_v31  ;;  %v479_v0 = vshll.u32 %v2513_v42, %v477_v31  ;;  %v482_v44 = vsub.s32 4294967266, %v477_v31  ;;  %v58_v37 = vcombine.high %v2369_v34, %v2369_v34 }
  0x7d   :  { %v2574_v54 = vmul.u32.u64.low %v2515_v32, %v556_v62  ;;  %v2575_v18 = vmul.u32.u64.high %v2515_v32, %v556_v62, %v2574_v54  ;;  %v1988_v15 = vadd.f32 -1.0, %v2371_v63  ;;  %1912 = vst [vmem:[#allocation7] sm:$0xf] %v1904_v39  ;;  %vm147_vm6 = vcmp.eq.f32.partialorder %v2364_v61, 0.0 }
  0x7e   :  { %v148_v19 = vand.u32 2147483648, %v2364_v61  ;;  %vm408_vm7 = vcmp.lt.s32.totalorder %v2274_v41, 0  ;;  %v480_v42 = vshrl.u32 %v462_v50, %v478_v57  ;;  %v483_v6 = vadd.s32 127, %v482_v44 }
  0x7f   :  { %v146_v33 = vsel %vm145_vm15, %v2364_v61, %v2486_v28  ;;  %v564_v23 = vmul.u32 %v2515_v32, %v548_v36  ;;  %v567_v24 = vadd.s32 1, %v2568_v21  ;;  %v94_v29 = vcombine.high %v2371_v63, %v2371_v63  ;;  %v2591_v27 = vpop.eup %2115 }
  0x80   :  { %vm401_vm8 = vcmp.eq.s32.totalorder %v396_v9, 2  ;;  %vm2595_vm9 = vcmp.le.f32.partialorder %v406_v11, 0.7853982  ;;  %v481_v1 = vor.u32 %v480_v42, %v479_v0  ;;  %v484_v25 = vshll.u32 %v483_v6, 23  ;;  %v2601_v28 = vpop.eup %2117 }
  0x81   :  { %v2599_v30 = vmul.f32 6.2831855, %v1988_v15  ;;  %vm397_vm10 = vcmp.lt.s32.totalorder %v396_v9, 2  ;;  %vm398_vm11 = vcmp.eq.s32.totalorder %v396_v9, 0  ;;  %v3321_v32 = vxor.u32 2147483648, %v2591_v27 }
  0x82   :  { %vm566_vm12 = vc.u32 %v2575_v18, %v2567_v35  ;;  %v3325_v63 = vxor.u32 2147483648, %v2601_v28  ;;  %v485_v38 = vor.u32 4788187, %v484_v25  ;;  %v488_v11 = vcvt.s32.f32 %v481_v1  ;;  %v1889_v15 = vld [vmem:[#allocation2 + $0x8] sm:$0xf] }
  0x83   :  { %v568_v7 = vsel %vm566_vm12, %v567_v24, %v2568_v21  ;;  %v403_v46 = vsel %vm401_vm8, %v3321_v32, %v2601_v28  ;;  %v492_v48 = vsub.s32 4, %v2495_v55  ;;  %v1989_v20 = vadd.f32 -1.0, %v94_v29 }
  0x84   :  { %v569_v50 = vadd.s32 %v568_v7, %v564_v23  ;;  %v400_v26 = vsel %vm398_vm11, %v2591_v27, %v3325_v63  ;;  %vm152_vm13 = vcmp.eq.f32.partialorder %v2463_v10, inf  ;;  %v486_v52 = vand.u32 2147483647, %v485_v38 }
  0x85   :  { %v612_v53 = vand.u32 2147483647, %v2599_v30  ;;  %v615_v36 = vand.u32 2139095040, %v2599_v30  ;;  %v2620_v58 = vsel %vm147_vm6, %v148_v19, %v146_v33  ;;  %v404_v31 = vsel %vm397_vm10, %v400_v26, %v403_v46 }
  0x86   :  { %v119_v62 = vmul.f32 0.6931472, %v2542_v22  ;;  %v570_v21 = vadd.s32 536870912, %v569_v50  ;;  %v405_v39 = vsel %vm395_vm5, nan, %v404_v31  ;;  %v489_v57 = vmul.f32 %v488_v11, %v486_v52 }
  0x87   :  { %v1980_v0 = vadd.f32 -1.0, %v2369_v34  ;;  %v616_v44 = vshrl.u32 %v615_v36, 23  ;;  %v1025_v54 = vmul.f32 %v405_v39, %v2620_v58  ;;  %v493_v61 = vsel %vm408_vm7, %v492_v48, %v2495_v55 }
  0x88   :  { %v2631_v19 = vshrl.u32 %v570_v21, 30  ;;  %v1981_v9 = vadd.f32 -1.0, %v58_v37  ;;  %v490_v42 = vxor.u32 2147483648, %v489_v57  ;;  %v619_v6 = vand.u32 8388607, %v612_v53 }
  0x89   :  { %v2008_v22 = vadd.s32 4294967169, %v616_v44  ;;  %v2635_v33 = vmul.f32 6.2831855, %v1989_v20  ;;  %v1033_v23 = vmul.f32 0.01, %v1025_v54  ;;  %v151_v34 = vmul.f32 %v2548_v17, %v2463_v10 }
  0x8a   :  { %v2639_v24 = vmul.f32 -2.0, %v119_v62  ;;  %v572_v29 = vshll.u32 %v2631_v19, 30  ;;  %v491_v55 = vsel %vm408_vm7, %v490_v42, %v489_v57  ;;  %v2646_v37 = vsel %vm2595_vm9, 0, %v493_v61 }
  0x8b   :  { %v80_v1 = vsub.f32 1.0, %v1980_v0  ;;  %v622_v25 = vadd.s32 1, %v2008_v22  ;;  %v1905_v38 = vadd.f32 %v1889_v15, %v1033_v23  ;;  %v494_v11 = vsel %vm2595_vm9, %v2274_v41, %v491_v55 }
  0x8c   :  { %v2651_v7 = vsub.s32 %v569_v50, %v572_v29  ;;  %v81_v17 = vsub.f32 1.0, %v1981_v9  ;;  %2119 = vcosq.f32 %v494_v11  ;;  %v620_v46 = vor.u32 8388608, %v619_v6 }
  0x8d   :  { %vm623_vm15 = vcmp.gt.s32.totalorder %v622_v25, 0  ;;  %v718_v48 = vand.u32 2139095040, %v2635_v33  ;;  %1913 = vst [vmem:[#allocation7 + $0x8] sm:$0xf] %v1905_v38  ;;  %2121 = vsinq.f32 %v494_v11  ;;  %v2655_v20 = vand.u32 3, %v2646_v37 }
  0x8e   :  { %v575_v26 = vsub.s32 0, %v2651_v7  ;;  %v624_v52 = vsel %vm623_vm15, %v622_v25, 0  ;;  %2123 = vrsqrt.f32 %v2639_v24  ;;  %v2664_v36 = vsel %vm152_vm13, %v2463_v10, %v151_v34 }
  0x8f   :  { %v2659_v4 = vshrl.u32 %v624_v52, 5  ;;  %v626_v50 = vand.u32 31, %v624_v52  ;;  %v155_v31 = vand.u32 2147483648, %v2463_v10  ;;  %2125 = vlog2.f32 %v80_v1 }
  0x90   :  { %v2005_v62 = vmin.u32 %v575_v26, %v2651_v7  ;;  %v565_v21 = vadd.s32 %v2567_v35, %v2575_v18  ;;  %2127 = vlog2.f32 %v81_v17  ;;  %v2670_v39 = vshll.u32 %v620_v46, 8 }
  0x91   :  { %v2672_v57 = vshrl.u32 %v718_v48, 23  ;;  %vm504_vm0 = vcmp.eq.s32.totalorder %v2655_v20, 2  ;;  %v627_v44 = vsub.s32 32, %v626_v50  ;;  %v629_v54 = vshll.u32 %v2229_v43, %v626_v50 }
  0x92   :  { %v577_v0 = vclz %v2005_v62  ;;  %v632_v15 = vshll.u32 %v2230_v45, %v626_v50  ;;  %vm501_vm1 = vcmp.eq.s32.totalorder %v2655_v20, 0  ;;  %v635_v61 = vshll.u32 %v2231_v47, %v626_v50 }
  0x93   :  { %v638_v9 = vshll.u32 %v2232_v49, %v626_v50  ;;  %v641_v35 = vshll.u32 %v2233_v56, %v626_v50  ;;  %vm644_vm2 = vcmp.lt.s32.totalorder %v2659_v4, 1  ;;  %vm500_vm3 = vcmp.lt.s32.totalorder %v2655_v20, 2 }
  0x94   :  { %v2006_v18 = vadd.s32 4294967294, %v577_v0  ;;  %v628_v42 = vshrl.u32 %v2229_v43, %v627_v44  ;;  %v630_v22 = vshrl.u32 %v2230_v45, %v627_v44  ;;  %v633_v6 = vshrl.u32 %v2231_v47, %v627_v44 }
  0x95   :  { %vm154_vm4 = vcmp.eq.f32.partialorder %v2463_v10, 0.0  ;;  %v636_v23 = vshrl.u32 %v2232_v49, %v627_v44  ;;  %v639_v34 = vshrl.u32 %v2233_v56, %v627_v44  ;;  %v642_v29 = vshrl.u32 %v3328_v60, %v627_v44 }
  0x96   :  { %vm645_vm6 = vcmp.lt.s32.totalorder %v2659_v4, 2  ;;  %vm2007_vm7 = vcmp.lt.s32.totalorder %v2006_v18, 0  ;;  %v631_v55 = vor.u32 %v630_v22, %v629_v54  ;;  %v634_v1 = vor.u32 %v633_v6, %v632_v15 }
  0x97   :  { %vm646_vm8 = vcmp.lt.s32.totalorder %v2659_v4, 3  ;;  %v580_v25 = vsel %vm2007_vm7, 0, %v2006_v18  ;;  %v637_v38 = vor.u32 %v636_v23, %v635_v61  ;;  %v640_v11 = vor.u32 %v639_v34, %v638_v9 }
  0x98   :  { %v643_v17 = vor.u32 %v642_v29, %v641_v35  ;;  %v581_v46 = vsub.s32 32, %v580_v25  ;;  %v582_v48 = vshll.u32 %v2651_v7, %v580_v25  ;;  %v585_v26 = vsub.s32 4294967266, %v580_v25 }
  0x99   :  { %vm647_vm9 = vcmp.lt.s32.totalorder %v2659_v4, 4  ;;  %v648_v52 = vsel %vm644_vm2, %v628_v42, %v631_v55  ;;  %v652_v62 = vsel %vm644_vm2, %v631_v55, %v634_v1  ;;  %v2702_v44 = vpop.eup %2119  ;;  %vm498_vm10 = vweird.f32 %v2274_v41 }
  0x9a   :  { %v649_v50 = vsel %vm647_vm9, %v637_v38, 2102212464  ;;  %v653_v0 = vsel %vm647_vm9, %v640_v11, 920167782  ;;  %v583_v54 = vshrl.u32 %v565_v21, %v581_v46  ;;  %v586_v15 = vadd.s32 127, %v585_v26  ;;  %v2708_v9 = vpop.eup %2121 }
  0x9b   :  { %v650_v7 = vsel %vm646_vm8, %v634_v1, %v649_v50  ;;  %v654_v61 = vsel %vm646_vm8, %v637_v38, %v653_v0  ;;  %v3319_v35 = vxor.u32 2147483648, %v2702_v44  ;;  %v656_v21 = vsel %vm644_vm2, %v634_v1, %v637_v38  ;;  %v2124_v22 = vpop.eup %2123 }
  0x9c   :  { %v651_v18 = vsel %vm645_vm6, %v648_v52, %v650_v7  ;;  %v655_v42 = vsel %vm645_vm6, %v652_v62, %v654_v61  ;;  %v3320_v6 = vxor.u32 2147483648, %v2708_v9  ;;  %v584_v23 = vor.u32 %v583_v54, %v582_v48  ;;  %v2126_v55 = vpop.eup %2125  ;;  %v2732_v48 = vld [vmem:[#allocation5 + $0x18] sm:$0xff] }
  0x9d   :  { %v587_v34 = vshll.u32 %v586_v15, 23  ;;  %v657_v29 = vsel %vm647_vm9, %v643_v17, 1326507024  ;;  %v506_v25 = vsel %vm504_vm0, %v3319_v35, %v2708_v9  ;;  %v2128_v26 = vpop.eup %2127  ;;  %v2753_v15 = vsel %vm154_vm4, %v155_v31, %v2664_v36 }
  0x9e   :  { %v658_v46 = vsel %vm646_vm8, %v640_v11, %v657_v29  ;;  %v2728_v1 = vmul.u32.u64.low %v2670_v39, %v655_v42  ;;  %v2729_v38 = vmul.u32.u64.high %v2670_v39, %v655_v42, %v2728_v1  ;;  %v503_v17 = vsel %vm501_vm1, %v2702_v44, %v3320_v6 }
  0x9f   :  { %v588_v52 = vor.u32 4788187, %v587_v34  ;;  %v591_v50 = vcvt.s32.f32 %v584_v23  ;;  %v659_v62 = vsel %vm645_vm6, %v656_v21, %v658_v46  ;;  %v507_v11 = vsel %vm500_vm3, %v503_v17, %v506_v25  ;;  %v1890_v34 = vld [vmem:[#allocation2 + $0x10] sm:$0xf] }
  0xa0   :  { %v2745_v0 = vmul.u32.u64.low %v2670_v39, %v659_v62  ;;  %v2746_v54 = vmul.u32.u64.high %v2670_v39, %v659_v62, %v2745_v0  ;;  %v508_v4 = vsel %vm498_vm10, nan, %v507_v11  ;;  %v47_v61 = vand.u32 65535, %v2732_v48 }
  0xa1   :  { %v589_v7 = vand.u32 2147483647, %v588_v52  ;;  %v1026_v20 = vmul.f32 %v508_v4, %v2753_v15  ;;  %v667_v42 = vmul.u32 %v2670_v39, %v651_v18  ;;  %v670_v21 = vadd.s32 1, %v2729_v38 }
  0xa2   :  { %v2012_v23 = vadd.s32 4294967169, %v2672_v57  ;;  %v158_v29 = vmul.f32 %v2124_v22, %v2639_v24  ;;  %vm511_vm11 = vcmp.lt.s32.totalorder %v2362_v59, 0  ;;  %v595_v36 = vsub.s32 4, %v2631_v19 }
  0xa3   :  { %v592_v10 = vmul.f32 %v591_v50, %v589_v7  ;;  %v1034_v31 = vmul.f32 0.01, %v1026_v20  ;;  %vm159_vm12 = vcmp.eq.f32.partialorder %v2639_v24, inf  ;;  %vm2768_vm13 = vcmp.le.f32.partialorder %v509_v3, 0.7853982 }
  0xa4   :  { %vm669_vm15 = vc.u32 %v2746_v54, %v2728_v1  ;;  %vm161_vm0 = vcmp.eq.f32.partialorder %v2639_v24, 0.0  ;;  %v715_v18 = vand.u32 2147483647, %v2635_v33  ;;  %v162_v46 = vand.u32 2147483648, %v2639_v24 }
  0xa5   :  { %v593_v39 = vxor.u32 2147483648, %v592_v10  ;;  %v671_v57 = vsel %vm669_vm15, %v670_v21, %v2729_v38  ;;  %v1906_v22 = vadd.f32 %v1890_v34, %v1034_v31  ;;  %v725_v52 = vadd.s32 1, %v2012_v23 }
  0xa6   :  { %v672_v17 = vadd.s32 %v671_v57, %v667_v42  ;;  %v160_v3 = vsel %vm159_vm12, %v2639_v24, %v158_v29  ;;  %v596_v62 = vsel %vm511_vm11, %v595_v36, %v2631_v19  ;;  %v121_v11 = vmul.f32 0.6931472, %v2126_v55 }
  0xa7   :  { %v594_v50 = vsel %vm511_vm11, %v593_v39, %v592_v10  ;;  %1914 = vst [vmem:[#allocation7 + $0x10] sm:$0xf] %v1906_v22  ;;  %v123_v4 = vmul.f32 0.6931472, %v2128_v26  ;;  %vm726_vm1 = vcmp.gt.s32.totalorder %v725_v52, 0  ;;  %v2791_v42 = vsel %vm2768_vm13, 0, %v596_v62 }
  0xa8   :  { %v597_v38 = vsel %vm2768_vm13, %v2362_v59, %v594_v50  ;;  %v673_v0 = vadd.s32 536870912, %v672_v17  ;;  %v722_v7 = vand.u32 8388607, %v715_v18  ;;  %v727_v20 = vsel %vm726_vm1, %v725_v52, 0 }
  0xa9   :  { %2129 = vcosq.f32 %v597_v38  ;;  %v729_v55 = vand.u32 31, %v727_v20  ;;  %v2797_v21 = vsel %vm161_vm0, %v162_v46, %v160_v3  ;;  %v2800_v26 = vand.u32 3, %v2791_v42 }
  0xaa   :  { %2131 = vsinq.f32 %v597_v38  ;;  %v2793_v19 = vshrl.u32 %v673_v0, 30  ;;  %v43_v23 = vshrl.u32 %v2732_v48, 16  ;;  %v87_v34 = vshll.u32 %v47_v61, 7 }
  0xab   :  { %v2803_v29 = vmul.f32 -2.0, %v121_v11  ;;  %v2806_v36 = vmul.f32 -2.0, %v123_v4  ;;  %v730_v31 = vsub.s32 32, %v729_v55  ;;  %v723_v25 = vor.u32 8388608, %v722_v7 }
  0xac   :  { %v675_v10 = vshll.u32 %v2793_v19, 30  ;;  %v2808_v39 = vshrl.u32 %v727_v20, 5  ;;  %v732_v24 = vshll.u32 %v2229_v43, %v729_v55  ;;  %v741_v57 = vshll.u32 %v2232_v49, %v729_v55 }
  0xad   :  { %v733_v46 = vshrl.u32 %v2230_v45, %v730_v31  ;;  %v735_v48 = vshll.u32 %v2230_v45, %v729_v55  ;;  %v738_v61 = vshll.u32 %v2231_v47, %v729_v55  ;;  %v736_v52 = vshrl.u32 %v2231_v47, %v730_v31 }
  0xae   :  { %v2812_v22 = vsub.s32 %v672_v17, %v675_v10  ;;  %v739_v3 = vshrl.u32 %v2232_v49, %v730_v31  ;;  %v742_v50 = vshrl.u32 %v2233_v56, %v730_v31  ;;  %v744_v62 = vshll.u32 %v2233_v56, %v729_v55 }
  0xaf   :  { %vm603_vm2 = vcmp.lt.s32.totalorder %v2800_v26, 2  ;;  %vm604_vm3 = vcmp.eq.s32.totalorder %v2800_v26, 0  ;;  %2133 = vrsqrt.f32 %v2803_v29  ;;  %v745_v11 = vshrl.u32 %v3328_v60, %v730_v31 }
  0xb0   :  { %v678_v17 = vsub.s32 0, %v2812_v22  ;;  %vm607_vm4 = vcmp.eq.s32.totalorder %v2800_v26, 2  ;;  %v668_v38 = vadd.s32 %v2728_v1, %v2746_v54  ;;  %2135 = vrsqrt.f32 %v2806_v36 }
  0xb1   :  { %v743_v0 = vor.u32 %v742_v50, %v741_v57  ;;  %v734_v7 = vor.u32 %v733_v46, %v732_v24  ;;  %v737_v20 = vor.u32 %v736_v52, %v735_v48  ;;  %v740_v55 = vor.u32 %v739_v3, %v738_v61 }
  0xb2   :  { %v2009_v4 = vmin.u32 %v678_v17, %v2812_v22  ;;  %vm601_vm6 = vweird.f32 %v2362_v59  ;;  %v731_v10 = vshrl.u32 %v2229_v43, %v730_v31  ;;  %v746_v35 = vor.u32 %v745_v11, %v744_v62 }
  0xb3   :  { %vm747_vm7 = vcmp.lt.s32.totalorder %v2808_v39, 1  ;;  %v2834_v6 = vshll.u32 %v723_v25, 8  ;;  %vm749_vm8 = vcmp.lt.s32.totalorder %v2808_v39, 3  ;;  %vm750_vm9 = vcmp.lt.s32.totalorder %v2808_v39, 4 }
  0xb4   :  { %v680_v32 = vclz %v2009_v4  ;;  %v51_v1 = vshll.u32 %v43_v23, 7  ;;  %vm748_vm11 = vcmp.lt.s32.totalorder %v2808_v39, 2  ;;  %v752_v54 = vsel %vm750_vm9, %v740_v55, 2102212464 }
  0xb5   :  { %v756_v24 = vsel %vm750_vm9, %v743_v0, 920167782  ;;  %v2839_v57 = vor.u32 1065353216, %v87_v34  ;;  %v755_v48 = vsel %vm747_vm7, %v734_v7, %v737_v20  ;;  %v759_v61 = vsel %vm747_vm7, %v737_v20, %v740_v55 }
  0xb6   :  { %v2841_v46 = vpop.eup %2129  ;;  %v2010_v31 = vadd.s32 4294967294, %v680_v32  ;;  %v757_v25 = vsel %vm749_vm8, %v740_v55, %v756_v24  ;;  %v751_v34 = vsel %vm747_vm7, %v731_v10, %v734_v7  ;;  %v760_v3 = vsel %vm750_vm9, %v746_v35, 1326507024 }
  0xb7   :  { %v2849_v52 = vpop.eup %2131  ;;  %v3322_v23 = vxor.u32 2147483648, %v2841_v46  ;;  %v1990_v50 = vadd.f32 -1.0, %v2839_v57  ;;  %v753_v62 = vsel %vm749_vm8, %v737_v20, %v752_v54  ;;  %v761_v17 = vsel %vm749_vm8, %v743_v0, %v760_v3 }
  0xb8   :  { %v3323_v32 = vxor.u32 2147483648, %v2849_v52  ;;  %vm2011_vm12 = vcmp.lt.s32.totalorder %v2010_v31, 0  ;;  %v758_v35 = vsel %vm748_vm11, %v755_v48, %v757_v25  ;;  %v762_v7 = vsel %vm748_vm11, %v759_v61, %v761_v17 }
  0xb9   :  { %v609_v11 = vsel %vm607_vm4, %v3322_v23, %v2849_v52  ;;  %v683_v4 = vsel %vm2011_vm12, 0, %v2010_v31  ;;  %v2878_v24 = vmul.u32.u64.low %v2834_v6, %v762_v7  ;;  %v2879_v31 = vmul.u32.u64.high %v2834_v6, %v762_v7, %v2878_v24  ;;  %v1891_v7 = vld [vmem:[#allocation2 + $0x18] sm:$0xf] }
  0xba   :  { %v606_v20 = vsel %vm604_vm3, %v2841_v46, %v3323_v32  ;;  %v684_v0 = vsub.s32 32, %v683_v4  ;;  %v685_v55 = vshll.u32 %v2812_v22, %v683_v4  ;;  %v688_v10 = vsub.s32 4294967266, %v683_v4 }
  0xbb   :  { %v610_v54 = vsel %vm603_vm2, %v606_v20, %v609_v11  ;;  %v2881_v48 = vmul.f32 6.2831855, %v1990_v50  ;;  %v754_v17 = vsel %vm748_vm11, %v751_v34, %v753_v62  ;;  %v95_v39 = vcombine.high %v2839_v57, %v2839_v57 }
  0xbc   :  { %v611_v25 = vsel %vm601_vm6, nan, %v610_v54  ;;  %v686_v61 = vshrl.u32 %v668_v38, %v684_v0  ;;  %v689_v3 = vadd.s32 127, %v688_v10  ;;  %v2134_v23 = vpop.eup %2133  ;;  %v770_v54 = vmul.u32 %v2834_v6, %v754_v17 }
  0xbd   :  { %v1027_v22 = vmul.f32 %v611_v25, %v2797_v21  ;;  %v2889_v26 = vmul.u32.u64.low %v2834_v6, %v758_v35  ;;  %v2890_v11 = vmul.u32.u64.high %v2834_v6, %v758_v35, %v2889_v26  ;;  %v2136_v4 = vpop.eup %2135  ;;  %v55_v38 = vor.u32 1065353216, %v51_v1 }
  0xbe   :  { %v687_v50 = vor.u32 %v686_v61, %v685_v55  ;;  %v690_v20 = vshll.u32 %v689_v3, 23  ;;  %v821_v35 = vand.u32 2139095040, %v2881_v48  ;;  %v165_v10 = vmul.f32 %v2134_v23, %v2803_v29 }
  0xbf   :  { %v1035_v24 = vmul.f32 0.01, %v1027_v22  ;;  %vm772_vm13 = vc.u32 %v2879_v31, %v2889_v26  ;;  %v773_v55 = vadd.s32 1, %v2890_v11  ;;  %v1982_v25 = vadd.f32 -1.0, %v55_v38 }
  0xc0   :  { %v691_v34 = vor.u32 4788187, %v690_v20  ;;  %v694_v62 = vcvt.s32.f32 %v687_v50  ;;  %vm166_vm15 = vcmp.eq.f32.partialorder %v2803_v29, inf  ;;  %vm2904_vm0 = vcmp.le.f32.partialorder %v612_v53, 0.7853982 }
  0xc1   :  { %v1907_v0 = vadd.f32 %v1891_v7, %v1035_v24  ;;  %v822_v57 = vshrl.u32 %v821_v35, 23  ;;  %vm614_vm1 = vcmp.lt.s32.totalorder %v2599_v30, 0  ;;  %v698_v61 = vsub.s32 4, %v2793_v19 }
  0xc2   :  { %v692_v1 = vand.u32 2147483647, %v691_v34  ;;  %v774_v23 = vsel %vm772_vm13, %v773_v55, %v2890_v11  ;;  %v3324_v3 = vand.u32 2147483647, %v2881_v48  ;;  %v1991_v50 = vadd.f32 -1.0, %v95_v39 }
  0xc3   :  { %1915 = vst [vmem:[#allocation7 + $0x18] sm:$0xf] %v1907_v0  ;;  %v775_v22 = vadd.s32 %v774_v23, %v770_v54  ;;  %v2016_v7 = vadd.s32 4294967169, %v822_v57  ;;  %v167_v53 = vsel %vm166_vm15, %v2803_v29, %v165_v10  ;;  %vm168_vm2 = vcmp.eq.f32.partialorder %v2803_v29, 0.0 }
  0xc4   :  { %v695_v17 = vmul.f32 %v694_v62, %v692_v1  ;;  %v169_v20 = vand.u32 2147483648, %v2803_v29  ;;  %v82_v24 = vsub.f32 1.0, %v1982_v25  ;;  %vm173_vm3 = vcmp.eq.f32.partialorder %v2806_v36, inf }
  0xc5   :  { %v776_v35 = vadd.s32 536870912, %v775_v22  ;;  %v828_v0 = vadd.s32 1, %v2016_v7  ;;  %v699_v11 = vsel %vm614_vm1, %v698_v61, %v2793_v19  ;;  %v172_v54 = vmul.f32 %v2136_v4, %v2806_v36 }
  0xc6   :  { %v696_v34 = vxor.u32 2147483648, %v695_v17  ;;  %vm175_vm4 = vcmp.eq.f32.partialorder %v2806_v36, 0.0  ;;  %v825_v39 = vand.u32 8388607, %v3324_v3  ;;  %v2927_v55 = vmul.f32 6.2831855, %v1991_v50 }
  0xc7   :  { %v2925_v10 = vshrl.u32 %v776_v35, 30  ;;  %vm829_vm7 = vcmp.gt.s32.totalorder %v828_v0, 0  ;;  %v176_v19 = vand.u32 2147483648, %v2806_v36  ;;  %2137 = vlog2.f32 %v82_v24 }
  0xc8   :  { %v697_v62 = vsel %vm614_vm1, %v696_v34, %v695_v17  ;;  %v830_v4 = vsel %vm829_vm7, %v828_v0, 0  ;;  %v2935_v1 = vsel %vm2904_vm0, 0, %v699_v11  ;;  %v59_v61 = vcombine.high %v55_v38, %v55_v38 }
  0xc9   :  { %v700_v25 = vsel %vm2904_vm0, %v2599_v30, %v697_v62  ;;  %v778_v57 = vshll.u32 %v2925_v10, 30  ;;  %v2939_v23 = vand.u32 3, %v2935_v1  ;;  %v174_v17 = vsel %vm173_vm3, %v2806_v36, %v172_v54 }
  0xca   :  { %2139 = vcosq.f32 %v700_v25  ;;  %v832_v7 = vand.u32 31, %v830_v4  ;;  %v826_v24 = vor.u32 8388608, %v825_v39  ;;  %v2946_v34 = vshrl.u32 %v830_v4, 5 }
  0xcb   :  { %2141 = vsinq.f32 %v700_v25  ;;  %v2944_v50 = vsub.s32 %v775_v22, %v778_v57  ;;  %v924_v6 = vand.u32 2139095040, %v2927_v55  ;;  %v2951_v38 = vsel %vm168_vm2, %v169_v20, %v167_v53 }
  0xcc   :  { %v833_v35 = vsub.s32 32, %v832_v7  ;;  %v2955_v0 = vsel %vm175_vm4, %v176_v19, %v174_v17  ;;  %v2958_v54 = vadd.f32 -1.0, %v59_v61  ;;  %vm710_vm8 = vcmp.eq.s32.totalorder %v2939_v23, 2 }
  0xcd   :  { %v781_v11 = vsub.s32 0, %v2944_v50  ;;  %v771_v22 = vadd.s32 %v2889_v26, %v2879_v31  ;;  %v835_v39 = vshll.u32 %v2229_v43, %v832_v7  ;;  %v838_v62 = vshll.u32 %v2230_v45, %v832_v7 }
  0xce   :  { %v841_v29 = vshll.u32 %v2231_v47, %v832_v7  ;;  %vm707_vm9 = vcmp.eq.s32.totalorder %v2939_v23, 0  ;;  %vm850_vm11 = vcmp.lt.s32.totalorder %v2946_v34, 1  ;;  %v2969_v53 = vshll.u32 %v826_v24, 8 }
  0xcf   :  { %v2013_v36 = vmin.u32 %v781_v11, %v2944_v50  ;;  %v925_v20 = vshrl.u32 %v924_v6, 23  ;;  %vm706_vm12 = vcmp.lt.s32.totalorder %v2939_v23, 2  ;;  %v834_v25 = vshrl.u32 %v2229_v43, %v833_v35 }
  0xd0   :  { %v836_v31 = vshrl.u32 %v2230_v45, %v833_v35  ;;  %v839_v26 = vshrl.u32 %v2231_v47, %v833_v35  ;;  %v842_v19 = vshrl.u32 %v2232_v49, %v833_v35  ;;  %v844_v57 = vshll.u32 %v2232_v49, %v832_v7 }
  0xd1   :  { %v783_v4 = vclz %v2013_v36  ;;  %v845_v61 = vshrl.u32 %v2233_v56, %v833_v35  ;;  %v847_v17 = vshll.u32 %v2233_v56, %v832_v7  ;;  %v848_v32 = vshrl.u32 %v3328_v60, %v833_v35 }
  0xd2   :  { %v837_v24 = vor.u32 %v836_v31, %v835_v39  ;;  %v840_v11 = vor.u32 %v839_v26, %v838_v62  ;;  %v843_v6 = vor.u32 %v842_v19, %v841_v29  ;;  %vm704_vm13 = vweird.f32 %v2599_v30 }
  0xd3   :  { %v2014_v3 = vadd.s32 4294967294, %v783_v4  ;;  %v846_v63 = vor.u32 %v845_v61, %v844_v57  ;;  %vm852_vm15 = vcmp.lt.s32.totalorder %v2946_v34, 3  ;;  %vm853_vm0 = vcmp.lt.s32.totalorder %v2946_v34, 4 }
  0xd4   :  { %v801_v36 = vsub.s32 4, %v2925_v10  ;;  %v849_v2 = vor.u32 %v848_v32, %v847_v17  ;;  %vm851_vm1 = vcmp.lt.s32.totalorder %v2946_v34, 2  ;;  %v854_v7 = vsel %vm850_vm11, %v834_v25, %v837_v24  ;;  %v2138_v39 = vpop.eup %2137 }
  0xd5   :  { %vm2015_vm2 = vcmp.lt.s32.totalorder %v2014_v3, 0  ;;  %v855_v62 = vsel %vm853_vm0, %v843_v6, 2102212464  ;;  %v858_v35 = vsel %vm850_vm11, %v837_v24, %v840_v11  ;;  %v859_v29 = vsel %vm853_vm0, %v846_v63, 920167782 }
  0xd6   :  { %v786_v26 = vsel %vm2015_vm2, 0, %v2014_v3  ;;  %v860_v19 = vsel %vm852_vm15, %v843_v6, %v859_v29  ;;  %v862_v32 = vsel %vm850_vm11, %v840_v11, %v843_v6  ;;  %v863_v4 = vsel %vm853_vm0, %v849_v2, 1326507024 }
  0xd7   :  { %v2989_v31 = vpop.eup %2139  ;;  %vm717_vm3 = vcmp.lt.s32.totalorder %v2635_v33, 0  ;;  %v787_v61 = vsub.s32 32, %v786_v26  ;;  %v788_v17 = vshll.u32 %v2944_v50, %v786_v26  ;;  %v791_v24 = vsub.s32 4294967266, %v786_v26 }
  0xd8   :  { %v2995_v57 = vpop.eup %2141  ;;  %v3329_v25 = vxor.u32 2147483648, %v2989_v31  ;;  %v856_v3 = vsel %vm852_vm15, %v840_v11, %v855_v62  ;;  %v861_v29 = vsel %vm851_vm1, %v858_v35, %v860_v19  ;;  %v864_v2 = vsel %vm852_vm15, %v846_v63, %v863_v4 }
  0xd9   :  { %v708_v14 = vxor.u32 2147483648, %v2995_v57  ;;  %v789_v60 = vshrl.u32 %v771_v22, %v787_v61  ;;  %v792_v50 = vadd.s32 127, %v791_v24  ;;  %v865_v26 = vsel %vm851_vm1, %v862_v32, %v864_v2 }
  0xda   :  { %v712_v6 = vsel %vm710_vm8, %v3329_v25, %v2995_v57  ;;  %vm3021_vm4 = vcmp.le.f32.partialorder %v715_v18, 0.7853982  ;;  %v3026_v62 = vmul.u32.u64.low %v2969_v53, %v865_v26  ;;  %v3027_v35 = vmul.u32.u64.high %v2969_v53, %v865_v26, %v3026_v62 }
  0xdb   :  { %v709_v11 = vsel %vm707_vm9, %v2989_v31, %v708_v14  ;;  %v2020_v22 = vadd.s32 4294967169, %v925_v20  ;;  %v790_v32 = vor.u32 %v789_v60, %v788_v17  ;;  %v793_v4 = vshll.u32 %v792_v50, 23 }
  0xdc   :  { %v713_v19 = vsel %vm706_vm12, %v709_v11, %v712_v6  ;;  %v125_v61 = vmul.f32 0.6931472, %v2138_v39  ;;  %v857_v18 = vsel %vm851_vm1, %v854_v7, %v856_v3  ;;  %v83_v23 = vsub.f32 1.0, %v2958_v54  ;;  %v1892_v6 = vld [vmem:[#allocation2 + $0x20] sm:$0xf] }
  0xdd   :  { %v714_v24 = vsel %vm704_vm13, nan, %v713_v19  ;;  %v3036_v2 = vmul.u32.u64.low %v2969_v53, %v861_v29  ;;  %v3037_v25 = vmul.u32.u64.high %v2969_v53, %v861_v29, %v3036_v2  ;;  %v794_v62 = vor.u32 4788187, %v793_v4 }
  0xde   :  { %v1028_v26 = vmul.f32 %v714_v24, %v2951_v38  ;;  %v797_v20 = vcvt.s32.f32 %v790_v32  ;;  %v931_v60 = vadd.s32 1, %v2020_v22  ;;  %v1133_v39 = vadd.s32 3, %v2457_v13 }
  0xdf   :  { %v1237_v17 = vadd.s32 3, %v2511_v8  ;;  %v1341_v50 = vadd.s32 3, %v2646_v37  ;;  %v795_v7 = vand.u32 2147483647, %v794_v62  ;;  %v873_v3 = vmul.u32 %v2969_v53, %v857_v18 }
  0xe0   :  { %v1036_v34 = vmul.f32 0.01, %v1028_v26  ;;  %vm875_vm7 = vc.u32 %v3027_v35, %v3036_v2  ;;  %v802_v29 = vsel %vm717_vm3, %v801_v36, %v2925_v10  ;;  %v3049_v11 = vmul.f32 -2.0, %v125_v61 }
  0xe1   :  { %v876_v54 = vadd.s32 1, %v3037_v25  ;;  %v921_v13 = vand.u32 2147483647, %v2927_v55  ;;  %v798_v8 = vmul.f32 %v797_v20, %v795_v7  ;;  %2143 = vlog2.f32 %v83_v23 }
  0xe2   :  { %v1908_v22 = vadd.f32 %v1892_v6, %v1036_v34  ;;  %vm932_vm8 = vcmp.gt.s32.totalorder %v931_v60, 0  ;;  %v3054_v53 = vand.u32 3, %v1133_v39  ;;  %v3056_v32 = vand.u32 3, %v1237_v17 }
  0xe3   :  { %v877_v37 = vsel %vm875_vm7, %v876_v54, %v3037_v25  ;;  %v933_v19 = vsel %vm932_vm8, %v931_v60, 0  ;;  %v799_v4 = vxor.u32 2147483648, %v798_v8  ;;  %v3060_v10 = vsel %vm3021_vm4, 0, %v802_v29 }
  0xe4   :  { %1916 = vst [vmem:[#allocation7 + $0x20] sm:$0xf] %v1908_v22  ;;  %v878_v36 = vadd.s32 %v877_v37, %v873_v3  ;;  %v935_v61 = vand.u32 31, %v933_v19  ;;  %v3063_v24 = vand.u32 3, %v3060_v10  ;;  %2145 = vrsqrt.f32 %v3049_v11 }
  0xe5   :  { %v928_v25 = vand.u32 8388607, %v921_v13  ;;  %v3068_v18 = vand.u32 3, %v1341_v50  ;;  %v800_v26 = vsel %vm717_vm3, %v799_v4, %v798_v8  ;;  %v3072_v20 = vshrl.u32 %v933_v19, 5 }
  0xe6   :  { %v879_v62 = vadd.s32 536870912, %v878_v36  ;;  %v936_v23 = vsub.s32 32, %v935_v61  ;;  %v803_v6 = vsel %vm3021_vm4, %v2635_v33, %v800_v26  ;;  %v938_v60 = vshll.u32 %v2229_v43, %v935_v61 }
  0xe7   :  { %v941_v39 = vshll.u32 %v2230_v45, %v935_v61  ;;  %v947_v17 = vshll.u32 %v2232_v49, %v935_v61  ;;  %2147 = vcosq.f32 %v803_v6  ;;  %v944_v7 = vshll.u32 %v2231_v47, %v935_v61 }
  0xe8   :  { %v3080_v50 = vshrl.u32 %v879_v62, 30  ;;  %v939_v34 = vshrl.u32 %v2230_v45, %v936_v23  ;;  %2149 = vsinq.f32 %v803_v6  ;;  %v942_v3 = vshrl.u32 %v2231_v47, %v936_v23 }
  0xe9   :  { %v945_v29 = vshrl.u32 %v2232_v49, %v936_v23  ;;  %v948_v63 = vshrl.u32 %v2233_v56, %v936_v23  ;;  %vm1135_vm9 = vcmp.lt.s32.totalorder %v3054_v53, 2  ;;  %v929_v22 = vor.u32 8388608, %v928_v25 }
  0xea   :  { %v881_v54 = vshll.u32 %v3080_v50, 30  ;;  %v937_v8 = vshrl.u32 %v2229_v43, %v936_v23  ;;  %v950_v37 = vshll.u32 %v2233_v56, %v935_v61  ;;  %v940_v19 = vor.u32 %v939_v34, %v938_v60 }
  0xeb   :  { %v943_v45 = vor.u32 %v942_v3, %v941_v39  ;;  %v949_v4 = vor.u32 %v948_v63, %v947_v17  ;;  %v3342_v26 = vmov 1326507024   ;;  %v3093_v47 = vadd.s32 %v3036_v2, %v3027_v35 }
  0xec   :  { %v951_v62 = vshrl.u32 %v3342_v26, %v936_v23  ;;  %v3095_v49 = vsub.s32 %v878_v36, %v881_v54  ;;  %vm953_vm11 = vcmp.lt.s32.totalorder %v3072_v20, 1  ;;  %vm1136_vm12 = vcmp.eq.s32.totalorder %v3054_v53, 0 }
  0xed   :  { %vm813_vm15 = vcmp.eq.s32.totalorder %v3063_v24, 2  ;;  %v946_v25 = vor.u32 %v945_v29, %v944_v7  ;;  %vm956_vm0 = vcmp.lt.s32.totalorder %v3072_v20, 4  ;;  %vm1139_vm1 = vcmp.eq.s32.totalorder %v3054_v53, 2 }
  0xee   :  { %v952_v43 = vor.u32 %v951_v62, %v950_v37  ;;  %vm810_vm2 = vcmp.eq.s32.totalorder %v3063_v24, 0  ;;  %v884_v56 = vsub.s32 0, %v3095_v49  ;;  %vm954_vm3 = vcmp.lt.s32.totalorder %v3072_v20, 2  ;;  %v3106_v2 = vpop.eup %2143 }
  0xef   :  { %vm955_vm4 = vcmp.lt.s32.totalorder %v3072_v20, 3  ;;  %v969_v35 = vshll.u32 %v929_v22, 8  ;;  %vm809_vm7 = vcmp.lt.s32.totalorder %v3063_v24, 2  ;;  %v957_v36 = vsel %vm953_vm11, %v937_v8, %v940_v19 }
  0xf0   :  { %v958_v61 = vsel %vm956_vm0, %v946_v25, 2102212464  ;;  %v961_v23 = vsel %vm953_vm11, %v940_v19, %v943_v45  ;;  %v962_v6 = vsel %vm956_vm0, %v949_v4, 920167782  ;;  %v2017_v60 = vmin.u32 %v884_v56, %v3095_v49 }
  0xf1   :  { %v3343_v39 = vxor.u32 2147483648, %v2522_v5  ;;  %v3344_v34 = vxor.u32 2147483648, %v2517_v40  ;;  %vm1240_vm8 = vcmp.eq.s32.totalorder %v3056_v32, 0  ;;  %v959_v3 = vsel %vm955_vm4, %v943_v45, %v958_v61  ;;  %v3135_v22 = vpop.eup %2145 }
  0xf2   :  { %v963_v29 = vsel %vm955_vm4, %v946_v25, %v962_v6  ;;  %v965_v63 = vsel %vm953_vm11, %v943_v45, %v946_v25  ;;  %v966_v54 = vsel %vm956_vm0, %v952_v43, 1326507024  ;;  %v3345_v56 = vxor.u32 2147483648, %v2601_v28 }
  0xf3   :  { %v1138_v17 = vsel %vm1136_vm12, %v2517_v40, %v3343_v39  ;;  %v1141_v7 = vsel %vm1139_vm1, %v3344_v34, %v2522_v5  ;;  %vm807_vm12 = vweird.f32 %v2635_v33  ;;  %v886_v40 = vclz %v2017_v60 }
  0xf4   :  { %v960_v5 = vsel %vm954_vm3, %v957_v36, %v959_v3  ;;  %v964_v8 = vsel %vm954_vm3, %v961_v23, %v963_v29  ;;  %vm1239_vm1 = vcmp.lt.s32.totalorder %v3056_v32, 2  ;;  %v967_v37 = vsel %vm955_vm4, %v949_v4, %v966_v54  ;;  %v3158_v61 = vpop.eup %2147 }
  0xf5   :  { %v3145_v19 = vmul.u32.u64.low %v969_v35, %v964_v8  ;;  %v3146_v45 = vmul.u32.u64.high %v969_v35, %v964_v8, %v3145_v19  ;;  %v976_v26 = vmul.u32 %v969_v35, %v960_v5  ;;  %v2018_v62 = vadd.s32 4294967294, %v886_v40  ;;  %v3166_v20 = vpop.eup %2149  ;;  %v1896_v8 = vld [vmem:[#allocation2] sm:$0xf0] }
  0xf6   :  { %v968_v25 = vsel %vm954_vm3, %v965_v63, %v967_v37  ;;  %v1142_v43 = vsel %vm1135_vm9, %v1138_v17, %v1141_v7  ;;  %v1242_v36 = vsel %vm1240_vm8, %v2591_v27, %v3345_v56  ;;  %vm1243_vm11 = vcmp.eq.s32.totalorder %v3056_v32, 2 }
  0xf7   :  { %v3160_v4 = vmul.u32.u64.low %v969_v35, %v968_v25  ;;  %v3161_v23 = vmul.u32.u64.high %v969_v35, %v968_v25, %v3160_v4  ;;  %v1143_v6 = vsel %vm292_vm14, nan, %v1142_v43  ;;  %v814_v53 = vxor.u32 2147483648, %v3158_v61 }
  0xf8   :  { %vm2019_vm9 = vcmp.lt.s32.totalorder %v2018_v62, 0  ;;  %v1872_v60 = vmul.f32 %v1143_v6, %v2481_v51  ;;  %v3346_v39 = vxor.u32 2147483648, %v2591_v27  ;;  %v811_v34 = vxor.u32 2147483648, %v3166_v20  ;;  %v1893_v6 = vld [vmem:[#allocation2 + $0x28] sm:$0xf] }
  0xf9   :  { %v889_v35 = vsel %vm2019_vm9, 0, %v2018_v62  ;;  %v979_v7 = vadd.s32 1, %v3146_v45  ;;  %v815_v3 = vsel %vm813_vm15, %v814_v53, %v3166_v20  ;;  %vm978_vm14 = vc.u32 %v3161_v23, %v3145_v19 }
  0xfa   :  { %v1245_v17 = vsel %vm1243_vm11, %v3346_v39, %v2601_v28  ;;  %v890_v29 = vsub.s32 32, %v889_v35  ;;  %v891_v51 = vshll.u32 %v3095_v49, %v889_v35  ;;  %v894_v63 = vsub.s32 4294967266, %v889_v35 }
  0xfb   :  { %v1246_v12 = vsel %vm1239_vm1, %v1242_v36, %v1245_v17  ;;  %v812_v27 = vsel %vm810_vm2, %v3158_v61, %v811_v34  ;;  %v904_v28 = vsub.s32 4, %v3080_v50  ;;  %v1880_v32 = vmul.f32 0.01, %v1872_v60 }
  0xfc   :  { %v816_v54 = vsel %vm809_vm7, %v812_v27, %v815_v3  ;;  %v892_v40 = vshrl.u32 %v3093_v47, %v890_v29  ;;  %v895_v5 = vadd.s32 127, %v894_v63  ;;  %v980_v49 = vsel %vm978_vm14, %v979_v7, %v3146_v45 }
  0xfd   :  { %v817_v37 = vsel %vm807_vm12, nan, %v816_v54  ;;  %v981_v62 = vadd.s32 %v980_v49, %v976_v26  ;;  %v1928_v25 = vrot.slane %v1880_v32, 4  ;;  %v1247_v43 = vsel %vm395_vm5, nan, %v1246_v12 }
  0xfe   :  { %v1029_v56 = vmul.f32 %v817_v37, %v2955_v0  ;;  %v893_v36 = vor.u32 %v892_v40, %v891_v51  ;;  %v896_v4 = vshll.u32 %v895_v5, 23  ;;  %v1873_v24 = vmul.f32 %v1247_v43, %v2620_v58 }
  0xff   :  { %v982_v47 = vadd.s32 536870912, %v981_v62  ;;  %v1944_v60 = vadd.f32 %v1928_v25, %v1896_v8  ;;  %vm1343_vm15 = vcmp.lt.s32.totalorder %v3068_v18, 2  ;;  %vm1344_vm0 = vcmp.eq.s32.totalorder %v3068_v18, 0 }
 0x100   :  { %v1037_v45 = vmul.f32 0.01, %v1029_v56  ;;  %v897_v39 = vor.u32 4788187, %v896_v4  ;;  %v900_v26 = vcvt.s32.f32 %v893_v36  ;;  %v1881_v17 = vmul.f32 0.01, %v1873_v24 }
 0x101   :  { %v3203_v35 = vshrl.u32 %v982_v47, 30  ;;  %1952 = vst [vmem:[#allocation7] sm:$0xf0] %v1944_v60  ;;  %v3347_v7 = vxor.u32 2147483648, %v2708_v9  ;;  %vm1347_vm5 = vcmp.eq.s32.totalorder %v3068_v18, 2  ;;  %v1445_v58 = vadd.s32 3, %v2791_v42 }
 0x102   :  { %v1909_v3 = vadd.f32 %v1893_v6, %v1037_v45  ;;  %v898_v29 = vand.u32 2147483647, %v897_v39  ;;  %v1929_v51 = vrot.slane %v1881_v17, 4  ;;  %v3348_v63 = vxor.u32 2147483648, %v2702_v44  ;;  %v1898_v60 = vld [vmem:[#allocation2 + $0x10] sm:$0xf0] }
 0x103   :  { %v1346_v12 = vsel %vm1344_vm0, %v2702_v44, %v3347_v7  ;;  %v984_v32 = vshll.u32 %v3203_v35, 30  ;;  %v1446_v40 = vand.u32 3, %v1445_v58  ;;  %v1549_v42 = vadd.s32 3, %v2935_v1 }
 0x104   :  { %v1349_v27 = vsel %vm1347_vm5, %v3348_v63, %v2708_v9  ;;  %1917 = vst [vmem:[#allocation7 + $0x28] sm:$0xf] %v1909_v3  ;;  %v901_v5 = vmul.f32 %v900_v26, %v898_v29  ;;  %v1945_v49 = vadd.f32 %v1929_v51, %v1897_v16  ;;  %v3349_v37 = vand.u32 2147483647, %v2881_v48 }
 0x105   :  { %v1350_v54 = vsel %vm1343_vm15, %v1346_v12, %v1349_v27  ;;  %vm820_vm3 = vcmp.lt.s32.totalorder %v2881_v48, 0  ;;  %v3226_v44 = vsub.s32 %v981_v62, %v984_v32  ;;  %vm1448_vm4 = vcmp.eq.s32.totalorder %v1446_v40, 0 }
 0x106   :  { %v1351_v8 = vsel %vm498_vm10, nan, %v1350_v54  ;;  %vm3221_vm2 = vcmp.le.f32.partialorder %v3349_v37, 0.7853982  ;;  %v902_v18 = vxor.u32 2147483648, %v901_v5  ;;  %v905_v43 = vsel %vm820_vm3, %v904_v28, %v3080_v50  ;;  %1953 = vst [vmem:[#allocation7 + $0x8] sm:$0xf0] %v1945_v49 }
 0x107   :  { %v1874_v9 = vmul.f32 %v1351_v8, %v2753_v15  ;;  %vm1451_vm10 = vcmp.eq.s32.totalorder %v1446_v40, 2  ;;  %v987_v41 = vsub.s32 0, %v3226_v44  ;;  %vm1447_vm7 = vcmp.lt.s32.totalorder %v1446_v40, 2 }
 0x108   :  { %v3352_v56 = vxor.u32 2147483648, %v2849_v52  ;;  %v903_v4 = vsel %vm820_vm3, %v902_v18, %v901_v5  ;;  %v3235_v62 = vmul.f32 0.6931472, %v3106_v2  ;;  %v3353_v15 = vxor.u32 2147483648, %v2841_v46 }
 0x109   :  { %v1882_v1 = vmul.f32 0.01, %v1874_v9  ;;  %v1550_v50 = vand.u32 3, %v1549_v42  ;;  %v179_v28 = vmul.f32 %v3135_v22, %v3049_v11  ;;  %v906_v6 = vsel %vm3221_vm2, %v2881_v48, %v903_v4  ;;  %v1900_v42 = vld [vmem:[#allocation2 + $0x20] sm:$0xf0] }
 0x10a   :  { %v1450_v36 = vsel %vm1448_vm4, %v2841_v46, %v3352_v56  ;;  %v1453_v24 = vsel %vm1451_vm10, %v3353_v15, %v2849_v52  ;;  %v2021_v47 = vmin.u32 %v987_v41, %v3226_v44  ;;  %v1653_v45 = vadd.s32 3, %v3060_v10 }
 0x10b   :  { %v907_v2 = vsel %vm3221_vm2, 0, %v905_v43  ;;  %2151 = vcosq.f32 %v906_v6  ;;  %v1930_v39 = vrot.slane %v1882_v1, 4  ;;  %v1454_v46 = vsel %vm1447_vm7, %v1450_v36, %v1453_v24 }
 0x10c   :  { %vm180_vm8 = vcmp.eq.f32.partialorder %v3049_v11, inf  ;;  %2153 = vsinq.f32 %v906_v6  ;;  %v989_v52 = vclz %v2021_v47  ;;  %v1455_v22 = vsel %vm601_vm6, nan, %v1454_v46 }
 0x10d   :  { %vm1551_vm1 = vcmp.lt.s32.totalorder %v1550_v50, 2  ;;  %v1946_v26 = vadd.f32 %v1930_v39, %v1898_v60  ;;  %v1875_v17 = vmul.f32 %v1455_v22, %v2797_v21  ;;  %vm1552_vm11 = vcmp.eq.s32.totalorder %v1550_v50, 0  ;;  %v1899_v21 = vld [vmem:[#allocation2 + $0x18] sm:$0xf0] }
 0x10e   :  { %vm1555_vm9 = vcmp.eq.s32.totalorder %v1550_v50, 2  ;;  %v2022_v10 = vadd.s32 4294967294, %v989_v52  ;;  %v1554_v16 = vsel %vm1552_vm11, %v2989_v31, %v708_v14  ;;  %v3354_v7 = vxor.u32 2147483648, %v2989_v31 }
 0x10f   :  { %v1654_v58 = vand.u32 3, %v1653_v45  ;;  %v977_v59 = vadd.s32 %v3145_v19, %v3161_v23  ;;  %1954 = vst [vmem:[#allocation7 + $0x10] sm:$0xf0] %v1946_v26  ;;  %v1883_v3 = vmul.f32 0.01, %v1875_v17  ;;  %v1757_v51 = vadd.s32 3, %v907_v2 }
 0x110   :  { %v1557_v12 = vsel %vm1555_vm9, %v3354_v7, %v2995_v57  ;;  %vm2023_vm6 = vcmp.lt.s32.totalorder %v2022_v10, 0  ;;  %v911_v54 = vand.u32 3, %v907_v2  ;;  %vm910_vm5 = vweird.f32 %v2881_v48  ;;  %v1894_v7 = vld [vmem:[#allocation2 + $0x30] sm:$0xf] }
 0x111   :  { %v1558_v29 = vsel %vm1551_vm1, %v1554_v16, %v1557_v12  ;;  %vm1655_vm14 = vcmp.lt.s32.totalorder %v1654_v58, 2  ;;  %vm1656_vm15 = vcmp.eq.s32.totalorder %v1654_v58, 0  ;;  %v992_v14 = vsel %vm2023_vm6, 0, %v2022_v10 }
 0x112   :  { %v1559_v63 = vsel %vm704_vm13, nan, %v1558_v29  ;;  %v1931_v27 = vrot.slane %v1883_v3, 4  ;;  %v1658_v57 = vsel %vm1656_vm15, %v3158_v61, %v811_v34  ;;  %v993_v19 = vsub.s32 32, %v992_v14  ;;  %v1902_v29 = vld [vmem:[#allocation2 + $0x30] sm:$0xf0] }
 0x113   :  { %v1876_v31 = vmul.f32 %v1559_v63, %v2951_v38  ;;  %v994_v23 = vshll.u32 %v3226_v44, %v992_v14  ;;  %v997_v32 = vsub.s32 4294967266, %v992_v14  ;;  %vm1659_vm0 = vcmp.eq.s32.totalorder %v1654_v58, 2 }
 0x114   :  { %v1947_v40 = vadd.f32 %v1931_v27, %v1899_v21  ;;  %v1661_v30 = vsel %vm1659_vm0, %v814_v53, %v3166_v20  ;;  %v995_v49 = vshrl.u32 %v977_v59, %v993_v19  ;;  %v1758_v37 = vand.u32 3, %v1757_v51 }
 0x115   :  { %v1884_v5 = vmul.f32 0.01, %v1876_v31  ;;  %v998_v8 = vadd.s32 127, %v997_v32  ;;  %v1662_v38 = vsel %vm1655_vm14, %v1658_v57, %v1661_v30  ;;  %vm182_vm13 = vcmp.eq.f32.partialorder %v3049_v11, 0.0 }
 0x116   :  { %1955 = vst [vmem:[#allocation7 + $0x18] sm:$0xf0] %v1947_v40  ;;  %v1663_v25 = vsel %vm807_vm12, nan, %v1662_v38  ;;  %v183_v44 = vand.u32 2147483648, %v3049_v11  ;;  %v996_v9 = vor.u32 %v995_v49, %v994_v23  ;;  %v181_v53 = vsel %vm180_vm8, %v3049_v11, %v179_v28 }
 0x117   :  { %v1932_v34 = vrot.slane %v1884_v5, 4  ;;  %v999_v61 = vshll.u32 %v998_v8, 23  ;;  %v1877_v20 = vmul.f32 %v1663_v25, %v2955_v0  ;;  %vm916_vm2 = vcmp.eq.s32.totalorder %v911_v54, 2  ;;  %v1901_v0 = vld [vmem:[#allocation2 + $0x28] sm:$0xf0] }
 0x118   :  { %v3282_v18 = vmul.f32 -2.0, %v3235_v62  ;;  %v2152_v41 = vpop.eup %2151  ;;  %v1003_v56 = vcvt.s32.f32 %v996_v9  ;;  %vm1763_vm12 = vcmp.eq.s32.totalorder %v1758_v37, 2  ;;  %vm912_vm3 = vcmp.lt.s32.totalorder %v911_v54, 2 }
 0x119   :  { %v1948_v43 = vadd.f32 %v1932_v34, %v1900_v42  ;;  %v1000_v1 = vor.u32 4788187, %v999_v61  ;;  %v1885_v33 = vmul.f32 0.01, %v1877_v20  ;;  %v2154_v36 = vpop.eup %2153  ;;  %vm913_vm4 = vcmp.eq.s32.totalorder %v911_v54, 0 }
 0x11a   :  { %v917_v4 = vxor.u32 2147483648, %v2152_v41  ;;  %vm1760_vm10 = vcmp.eq.s32.totalorder %v1758_v37, 0  ;;  %v914_v15 = vxor.u32 2147483648, %v2154_v36  ;;  %vm1759_vm7 = vcmp.lt.s32.totalorder %v1758_v37, 2  ;;  %v1895_v20 = vld [vmem:[#allocation2 + $0x38] sm:$0xf] }
 0x11b   :  { %1956 = vst [vmem:[#allocation7 + $0x20] sm:$0xf0] %v1948_v43  ;;  %v1001_v24 = vand.u32 2147483647, %v1000_v1  ;;  %v1933_v50 = vrot.slane %v1885_v33, 4  ;;  %v184_v62 = vsel %vm182_vm13, %v183_v44, %v181_v53  ;;  %2155 = vrsqrt.f32 %v3282_v18 }
 0x11c   :  { %v918_v28 = vsel %vm916_vm2, %v917_v4, %v2154_v36  ;;  %v1765_v6 = vsel %vm1763_vm12, %v917_v4, %v2154_v36  ;;  %v915_v47 = vsel %vm913_vm4, %v2152_v41, %v914_v15  ;;  %v1762_v2 = vsel %vm1760_vm10, %v2152_v41, %v914_v15  ;;  %v1903_v43 = vld [vmem:[#allocation2 + $0x38] sm:$0xf0] }
 0x11d   :  { %v1004_v60 = vmul.f32 %v1003_v56, %v1001_v24  ;;  %v1949_v45 = vadd.f32 %v1933_v50, %v1901_v0  ;;  %v919_v39 = vsel %vm912_vm3, %v915_v47, %v918_v28  ;;  %vm923_vm8 = vcmp.lt.s32.totalorder %v2927_v55, 0 }
 0x11e   :  { %v1007_v46 = vsub.s32 4, %v3203_v35  ;;  %v1766_v52 = vsel %vm1759_vm7, %v1762_v2, %v1765_v6  ;;  %v920_v11 = vsel %vm910_vm5, nan, %v919_v39  ;;  %vm3295_vm1 = vcmp.le.f32.partialorder %v921_v13, 0.7853982 }
 0x11f   :  { %v1005_v26 = vxor.u32 2147483648, %v1004_v60  ;;  %1957 = vst [vmem:[#allocation7 + $0x28] sm:$0xf0] %v1949_v45  ;;  %v1767_v17 = vsel %vm910_vm5, nan, %v1766_v52  ;;  %v1030_v10 = vmul.f32 %v920_v11, %v184_v62  ;;  %vm187_vm11 = vcmp.eq.f32.partialorder %v3282_v18, inf }
 0x120   :  { %v1878_v16 = vmul.f32 %v1767_v17, %v184_v62  ;;  %v1008_v59 = vsel %vm923_vm8, %v1007_v46, %v3203_v35  ;;  %vm189_vm9 = vcmp.eq.f32.partialorder %v3282_v18, 0.0  ;;  %v190_v23 = vand.u32 2147483648, %v3282_v18 }
 0x121   :  { %v1006_v12 = vsel %vm923_vm8, %v1005_v26, %v1004_v60  ;;  %v1038_v58 = vmul.f32 0.01, %v1030_v10  ;;  %v1010_v48 = vsel %vm3295_vm1, 0, %v1008_v59  ;;  %vm1013_vm2 = vweird.f32 %v2927_v55 }
 0x122   :  { %v1009_v3 = vsel %vm3295_vm1, %v2927_v55, %v1006_v12  ;;  %v1886_v13 = vmul.f32 0.01, %v1878_v16  ;;  %v1861_v14 = vadd.s32 3, %v1010_v48  ;;  %v1014_v31 = vand.u32 3, %v1010_v48 }
 0x123   :  { %2157 = vcosq.f32 %v1009_v3  ;;  %v1910_v51 = vadd.f32 %v1894_v7, %v1038_v58 }
 0x124   :  { %2159 = vsinq.f32 %v1009_v3  ;;  %v1934_v21 = vrot.slane %v1886_v13, 4  ;;  %v1862_v35 = vand.u32 3, %v1861_v14  ;;  %vm1019_vm6 = vcmp.eq.s32.totalorder %v1014_v31, 2 }
 0x125   :  { %1918 = vst [vmem:[#allocation7 + $0x30] sm:$0xf] %v1910_v51  ;;  %vm1016_vm15 = vcmp.eq.s32.totalorder %v1014_v31, 0  ;;  %vm1015_vm13 = vcmp.lt.s32.totalorder %v1014_v31, 2 }
 0x126   :  { %v1950_v63 = vadd.f32 %v1934_v21, %v1902_v29  ;;  %vm1867_vm14 = vcmp.eq.s32.totalorder %v1862_v35, 2  ;;  %vm1864_vm0 = vcmp.eq.s32.totalorder %v1862_v35, 0  ;;  %vm1863_vm5 = vcmp.lt.s32.totalorder %v1862_v35, 2 }
 0x128   :  { %1958 = vst [vmem:[#allocation7 + $0x30] sm:$0xf0] %v1950_v63  ;;  %v2156_v27 = vpop.eup %2155 }
 0x129   :  { %v186_v57 = vmul.f32 %v2156_v27, %v3282_v18 }
 0x12b   :  { %v188_v54 = vsel %vm187_vm11, %v3282_v18, %v186_v57 }
 0x12c   :  { %v191_v8 = vsel %vm189_vm9, %v190_v23, %v188_v54 }
 0x130   :  { %v2158_v19 = vpop.eup %2157 }
 0x131   :  { %v2160_v32 = vpop.eup %2159  ;;  %v1020_v40 = vxor.u32 2147483648, %v2158_v19 }
 0x132   :  { %v1017_v5 = vxor.u32 2147483648, %v2160_v32 }
 0x133   :  { %v1021_v30 = vsel %vm1019_vm6, %v1020_v40, %v2160_v32  ;;  %v1869_v49 = vsel %vm1867_vm14, %v1020_v40, %v2160_v32 }
 0x134   :  { %v1018_v42 = vsel %vm1016_vm15, %v2158_v19, %v1017_v5  ;;  %v1866_v38 = vsel %vm1864_vm0, %v2158_v19, %v1017_v5 }
 0x135   :  { %v1022_v37 = vsel %vm1015_vm13, %v1018_v42, %v1021_v30  ;;  %v1870_v34 = vsel %vm1863_vm5, %v1866_v38, %v1869_v49 }
 0x136   :  { %v1023_v25 = vsel %vm1013_vm2, nan, %v1022_v37  ;;  %v1871_v44 = vsel %vm1013_vm2, nan, %v1870_v34 }
 0x137   :  { %v1031_v9 = vmul.f32 %v1023_v25, %v191_v8  ;;  %v1879_v61 = vmul.f32 %v1871_v44, %v191_v8 }
 0x139   :  { %v1039_v53 = vmul.f32 0.01, %v1031_v9  ;;  %v1887_v18 = vmul.f32 0.01, %v1879_v61 }
 0x13b   :  { %v1911_v41 = vadd.f32 %v1895_v20, %v1039_v53  ;;  %v1935_v1 = vrot.slane %v1887_v18, 4 }
 0x13d   :  { %1919 = vst [vmem:[#allocation7 + $0x38] sm:$0xf] %v1911_v41  ;;  %v1951_v55 = vadd.f32 %v1935_v1, %v1903_v43 }
 0x13f   :  { %1959 = vst [vmem:[#allocation7 + $0x38] sm:$0xf0] %v1951_v55 }
 0x140   :  { %2212 = shalt.err (!%p2209_p0)
}
 0x141   :  { %1969 = dma.vmem_to_hbm [thread:$0]  %s1967_s1, 1024, %s3318_s2, [#allocation4]  }
 0x142   :  { %2225 = dma.done.wait [#allocation4], 1024  }
 0x143   :  { %2226 = vsyncadd [#allocation4], 4294966272 }
 0x144   :  { %1973 = vsyncpa [#allocation3], 1 }
 0x145   :  { %1974 = vsyncpa [#allocation6], 1 }
 0x146   :  { %1975 = vsyncpa [#allocation4], 1 }

</bundles_post_ra>
